<compile_context>
chip_gen: v7x
topology: tpu7x:2x2x1
jax: 0.10.0
libtpu: 0.0.40
codegen_flags: <defaults>
</compile_context>

<pallas_src>
import functools
import math

import jax
import jax.numpy as jnp
from jax.experimental import pallas as pl
from jax.experimental.pallas import tpu as pltpu


def _round_up(x, m):
    return ((x + m - 1) // m) * m


# ---------------------------------------------------------------------------------------
# Kernel 1: fused QKV projection, written back head-major (B, H, P, Dh) in bf16.
# ---------------------------------------------------------------------------------------
def _qkv_kernel(x_ref, wqkv_ref, q_ref, k_ref, v_ref):
    TP = x_ref.shape[1]
    H = q_ref.shape[1]
    Dh = q_ref.shape[3]
    hd = H * Dh

    xb = x_ref[0].astype(jnp.bfloat16)                                     # (TP, Dp)
    qkv = jnp.dot(xb, wqkv_ref[...], preferred_element_type=jnp.float32)   # (TP, 3*hd)

    def head_major(m):                       # (TP, hd) -> (H, TP, Dh), bf16
        return jnp.transpose(m.astype(jnp.bfloat16).reshape(TP, H, Dh), (1, 0, 2))

    q_ref[0] = head_major(qkv[:, 0:hd])      # 1/sqrt(d_head) already folded into W_Q
    k_ref[0] = head_major(qkv[:, hd:2 * hd])
    v_ref[0] = head_major(qkv[:, 2 * hd:3 * hd])


# ---------------------------------------------------------------------------------------
# Kernel 2: flash-style causal attention + output projection + MLP + both residuals,
# for one (batch, query-tile) grid point.
# ---------------------------------------------------------------------------------------
def _attn_mlp_kernel(x_ref, q_ref, k_ref, v_ref, wo_ref, win_ref, bin_ref,
                     wout_ref, bout_ref, o_ref, *, act_type, bf16_exp):
    TQ = x_ref.shape[1]
    H = q_ref.shape[1]
    Dh = q_ref.shape[3]
    hd = H * Dh
    TK = TQ                                   # key-block size == query-tile size

    qi = pl.program_id(1)
    q0 = qi * TQ                              # first (padded) query position of this tile

    q_t = q_ref[0]                            # (H, TQ, Dh) bf16 (pre-scaled)
    x_t = x_ref[0]                            # (TQ, Dp)    f32

    # Causal-mask index planes (built once per tile).
    row = jax.lax.broadcasted_iota(jnp.int32, (TQ, TK), 0) + q0   # query positions
    col = jax.lax.broadcasted_iota(jnp.int32, (TQ, TK), 1)        # key offset in block

    def kv_step(kb, carry):
        m_old, l_old, acc_old = carry
        kstart = pl.multiple_of(kb * TK, TK)
        k_blk = k_ref[0, :, pl.ds(kstart, TK), :]                 # (H, TK, Dh) bf16
        v_blk = v_ref[0, :, pl.ds(kstart, TK), :]                 # (H, TK, Dh) bf16

        s = jnp.einsum('hqd,hkd->hqk', q_t, k_blk,
                       preferred_element_type=jnp.float32)        # (H, TQ, TK)
        keep = (col + kstart) <= row                              # causal: key <= query
        s = jnp.where(keep[None, :, :], s, jnp.float32(-1e9))

        m_new = jnp.maximum(m_old, jnp.max(s, axis=-1, keepdims=True))
        alpha = jnp.exp(m_old - m_new)
        sm = s - m_new
        if bf16_exp:                          # bf16 EUP on v6e / v7x (~2x exp throughput)
            p = jnp.exp(sm.astype(jnp.bfloat16))
        else:                                 # v5e: no bf16 EUP
            p = jnp.exp(sm).astype(jnp.bfloat16)

        l_new = alpha * l_old + jnp.sum(p.astype(jnp.float32), axis=-1, keepdims=True)
        pv = jnp.einsum('hqk,hkd->hqd', p, v_blk,
                        preferred_element_type=jnp.float32)       # (H, TQ, Dh)
        acc_new = alpha * acc_old + pv
        return m_new, l_new, acc_new

    m0 = jnp.full((H, TQ, 1), -1e30, jnp.float32)
    l0 = jnp.zeros((H, TQ, 1), jnp.float32)
    a0 = jnp.zeros((H, TQ, Dh), jnp.float32)
    # Causal skip: only the first (qi + 1) key blocks can contain unmasked keys.
    _, l_f, acc = jax.lax.fori_loop(0, qi + 1, kv_step, (m0, l0, a0))

    z = acc * pl.reciprocal(l_f, approx=True)                     # (H, TQ, Dh)

    # Output projection: one full-depth MXU matmul (z relaid out once per tile).
    z_flat = jnp.transpose(z.astype(jnp.bfloat16), (1, 0, 2)).reshape(TQ, hd)
    attn_out = jnp.dot(z_flat, wo_ref[...],
                       preferred_element_type=jnp.float32)        # (TQ, Dp)

    x1 = x_t + attn_out                                           # first residual (f32)

    # MLP (position-wise, tiles with the query dim).
    h = jnp.dot(x1.astype(jnp.bfloat16), win_ref[...],
                preferred_element_type=jnp.float32) + bin_ref[...]
    if act_type == 'ReLU':
        h = jnp.maximum(h, 0.0)
    else:
        # tanh-approximate GeLU (EUP slot); see TODO(synk) about exact-erf parity.
        h = jax.nn.gelu(h, approximate=True)
    mlp_out = jnp.dot(h.astype(jnp.bfloat16), wout_ref[...],
                      preferred_element_type=jnp.float32) + bout_ref[...]

    o_ref[0] = (x1 + mlp_out).astype(o_ref.dtype)                 # second residual


# ---------------------------------------------------------------------------------------
# VMEM budgeting / tile selection (generation-aware).
# ---------------------------------------------------------------------------------------
def _physical_vmem_bytes():
    try:
        return int(pltpu.get_tpu_info().vmem_capacity_bytes)
    except Exception:
        return 64 * 2 ** 20     # conservative: v7x has 64 MiB per TensorCore


def _qkv_vmem_bytes(TQ, H, Dh_p, Dp, single_buffer):
    hd_p = H * Dh_p
    wbuf = 1 if single_buffer else 2
    return (Dp * 3 * hd_p * 2 * wbuf          # fused weight (bf16)
            + 2 * TQ * Dp * 4                 # x tile (double-buffered)
            + TQ * 3 * hd_p * (4 + 2)         # qkv f32 + bf16 copies
            + 3 * H * TQ * Dh_p * 2 * 2)      # q/k/v output tiles (double-buffered)


def _attn_mlp_vmem_bytes(TQ, P_pad, H, Dh_p, Dp, Mp, single_buffer):
    hd_p = H * Dh_p
    wbuf = 1 if single_buffer else 2
    kvbuf = 1 if single_buffer else 2
    weights = ((hd_p * Dp + 2 * Dp * Mp) * 2 + (Mp + Dp) * 4) * wbuf
    io = 2 * TQ * Dp * 4 * 2                  # x in + out blocks (double-buffered)
    qb = H * TQ * Dh_p * 2 * 2                # Q tile (double-buffered)
    kv = 2 * H * P_pad * Dh_p * 2 * kvbuf     # K + V (full padded sequence)
    tmp = (2 * H * TQ * TQ * 4                # score + exp tile
           + 2 * H * TQ * Dh_p * 4            # online-softmax accumulator + pv
           + 2 * TQ * Mp * 4                  # MLP hidden
           + TQ * hd_p * 2 + 4 * TQ * Dp * 4)
    return weights + io + qb + kv + int(1.5 * tmp)


def _pick_tq(P, H, Dh_p, Dp, Mp, vmem_budget):
    tq = 256                                  # matches 256-wide MXU on v6e/v7x
    while tq > 8 and tq >= 2 * _round_up(P, 8):
        tq //= 2                              # don't massively over-pad tiny sequences
    while tq > 8:
        p_pad = _round_up(P, tq)
        if _attn_mlp_vmem_bytes(tq, p_pad, H, Dh_p, Dp, Mp, True) <= 0.7 * vmem_budget:
            break
        tq //= 2
    return tq


def _has_bf16_eup():
    try:
        kind = jax.devices()[0].device_kind.lower()
    except Exception:
        return False
    return ('v6' in kind) or ('v7' in kind)


# ---------------------------------------------------------------------------------------
# pallas_call builders.
# ---------------------------------------------------------------------------------------
def _const_spec(shape, n_grid, single_buffer):
    idx = lambda *args: (0,) * len(shape)
    if single_buffer:
        return pl.BlockSpec(shape, idx, pipeline_mode=pl.Buffered(1))
    return pl.BlockSpec(shape, idx)


def _qkv_call(B, P_pad, Dp, H, Dh_p, TQ, single_buffer, vmem_budget):
    hd_p = H * Dh_p
    nP = P_pad // TQ
    est = _qkv_vmem_bytes(TQ, H, Dh_p, Dp, single_buffer)
    vmem_limit = int(min(vmem_budget, max(32 * 2 ** 20, int(1.25 * est))))

    qkv_shape = jax.ShapeDtypeStruct((B, H, P_pad, Dh_p), jnp.bfloat16)
    out_spec = pl.BlockSpec((1, H, TQ, Dh_p), lambda b, p: (b, 0, p, 0))

    return pl.pallas_call(
        _qkv_kernel,
        out_shape=(qkv_shape, qkv_shape, qkv_shape),
        grid_spec=pltpu.PrefetchScalarGridSpec(
            num_scalar_prefetch=0,
            grid=(B, nP),
            in_specs=[
                pl.BlockSpec((1, TQ, Dp), lambda b, p: (b, p, 0)),     # x tile
                _const_spec((Dp, 3 * hd_p), 2, single_buffer),         # fused QKV weight
            ],
            out_specs=[out_spec, out_spec, out_spec],
        ),
        compiler_params=pltpu.CompilerParams(
            dimension_semantics=("parallel", "parallel"),
            vmem_limit_bytes=vmem_limit,
        ),
    )


def _attn_mlp_call(B, P_pad, Dp, H, Dh_p, Mp, TQ, act_type, bf16_exp,
                   single_buffer, vmem_budget):
    hd_p = H * Dh_p
    nQ = P_pad // TQ
    est = _attn_mlp_vmem_bytes(TQ, P_pad, H, Dh_p, Dp, Mp, single_buffer)
    vmem_limit = int(min(vmem_budget, max(32 * 2 ** 20, int(1.25 * est))))

    kernel = functools.partial(_attn_mlp_kernel, act_type=act_type, bf16_exp=bf16_exp)

    def kv_spec():
        shape = (1, H, P_pad, Dh_p)
        idx = lambda b, q: (b, 0, 0, 0)       # constant over the query-tile axis
        if single_buffer:
            return pl.BlockSpec(shape, idx, pipeline_mode=pl.Buffered(1))
        return pl.BlockSpec(shape, idx)

    return pl.pallas_call(
        kernel,
        out_shape=jax.ShapeDtypeStruct((B, P_pad, Dp), jnp.float32),
        grid_spec=pltpu.PrefetchScalarGridSpec(
            num_scalar_prefetch=0,
            grid=(B, nQ),
            in_specs=[
                pl.BlockSpec((1, TQ, Dp), lambda b, q: (b, q, 0)),          # x tile
                pl.BlockSpec((1, H, TQ, Dh_p), lambda b, q: (b, 0, q, 0)),  # Q tile
                kv_spec(),                                                  # K (full seq)
                kv_spec(),                                                  # V (full seq)
                _const_spec((hd_p, Dp), 2, single_buffer),                  # W_O (flat)
                _const_spec((Dp, Mp), 2, single_buffer),                    # W_in^T
                _const_spec((1, Mp), 2, single_buffer),                     # b_in
                _const_spec((Mp, Dp), 2, single_buffer),                    # W_out^T
                _const_spec((1, Dp), 2, single_buffer),                     # b_out
            ],
            out_specs=pl.BlockSpec((1, TQ, Dp), lambda b, q: (b, q, 0)),
        ),
        compiler_params=pltpu.CompilerParams(
            dimension_semantics=("parallel", "parallel"),
            vmem_limit_bytes=vmem_limit,
        ),
    )


# ---------------------------------------------------------------------------------------
# Host-side weight repacking: scale folded into W_Q, everything padded to 128 multiples,
# matmul weights in bf16, head-major / transposed layouts, 2-D biases.
# ---------------------------------------------------------------------------------------
def _prep_weights(params, H, Dh, Dh_p, D, Dp, d_mlp, Mp):
    hd_p = H * Dh_p
    pad_hdd = ((0, 0), (0, Dh_p - Dh), (0, Dp - D))

    wq = jnp.pad(params['W_Q'].astype(jnp.float32) / jnp.float32(math.sqrt(Dh)), pad_hdd)
    wk = jnp.pad(params['W_K'].astype(jnp.float32), pad_hdd)
    wv = jnp.pad(params['W_V'].astype(jnp.float32), pad_hdd)
    wqkv = jnp.concatenate([wq.reshape(hd_p, Dp), wk.reshape(hd_p, Dp),
                            wv.reshape(hd_p, Dp)], axis=0).T.astype(jnp.bfloat16)

    wo = params['W_O'].astype(jnp.float32).reshape(D, H, Dh)
    wo = jnp.pad(wo, ((0, Dp - D), (0, 0), (0, Dh_p - Dh)))
    wo = jnp.transpose(wo, (1, 2, 0)).reshape(hd_p, Dp).astype(jnp.bfloat16)

    w_in = jnp.pad(params['W_in'].astype(jnp.float32),
                   ((0, Mp - d_mlp), (0, Dp - D))).T.astype(jnp.bfloat16)     # (Dp, Mp)
    b_in = jnp.pad(params['b_in'].astype(jnp.float32), (0, Mp - d_mlp)).reshape(1, Mp)
    w_out = jnp.pad(params['W_out'].astype(jnp.float32),
                    ((0, Dp - D), (0, Mp - d_mlp))).T.astype(jnp.bfloat16)    # (Mp, Dp)
    b_out = jnp.pad(params['b_out'].astype(jnp.float32), (0, Dp - D)).reshape(1, Dp)

    return wqkv, wo, w_in, b_in, w_out, b_out


def transformer_block(x, params, *, act_type='GeLU'):
    assert act_type in ('ReLU', 'GeLU')
    B, P, D = x.shape
    H, Dh, _ = params['W_K'].shape
    d_mlp = params['W_in'].shape[0]

    Dh_p = _round_up(Dh, 128)
    Dp = _round_up(D, 128)
    Mp = _round_up(d_mlp, 128)

    vmem_budget = _physical_vmem_bytes()
    TQ = _pick_tq(P, H, Dh_p, Dp, Mp, vmem_budget)
    P_pad = _round_up(P, TQ)

    x_p = jnp.pad(x.astype(jnp.float32), ((0, 0), (0, P_pad - P), (0, Dp - D)))
    wqkv, wo, w_in, b_in, w_out, b_out = _prep_weights(params, H, Dh, Dh_p, D, Dp,
                                                       d_mlp, Mp)
    bf16_exp = _has_bf16_eup()

    def run(single_buffer):
        q, k, v = _qkv_call(B, P_pad, Dp, H, Dh_p, TQ, single_buffer,
                            vmem_budget)(x_p, wqkv)
        out = _attn_mlp_call(B, P_pad, Dp, H, Dh_p, Mp, TQ, act_type, bf16_exp,
                             single_buffer, vmem_budget)(
            x_p, q, k, v, wo, w_in, b_in, w_out, b_out)
        return jax.block_until_ready(out)

    try:
        out_p = run(True)
    except Exception:
        # Fallback if pl.Buffered(1) single-buffering is unsupported on this jax version.
        out_p = run(False)
    return out_p[:, :P, :D]


# ---------------------------------------------------------------------------------------
# Pure-JAX f32 reference mirroring the PyTorch forward.
# ---------------------------------------------------------------------------------------
def transformer_block_ref(x, params, *, act_type='GeLU'):
    Dh = params['W_K'].shape[1]
    k = jnp.einsum('ihd,bpd->biph', params['W_K'], x)
    q = jnp.einsum('ihd,bpd->biph', params['W_Q'], x)
    v = jnp.einsum('ihd,bpd->biph', params['W_V'], x)
    scores = jnp.einsum('biph,biqh->biqp', k, q)
    P = x.shape[1]
    mask = jnp.tril(jnp.ones((P, P), jnp.float32))
    scores = scores * mask[None, None] - 1.0e10 * (1.0 - mask)[None, None]
    attn = jax.nn.softmax(scores / math.sqrt(Dh), axis=-1)
    z = jnp.einsum('biph,biqp->biqh', v, attn)
    B, H, Pq, _ = z.shape
    z_flat = jnp.transpose(z, (0, 2, 1, 3)).reshape(B, Pq, H * Dh)
    attn_out = jnp.einsum('df,bqf->bqd', params['W_O'], z_flat)
    x1 = x + attn_out
    h = jnp.einsum('md,bpd->bpm', params['W_in'], x1) + params['b_in']
    if act_type == 'ReLU':
        h = jnp.maximum(h, 0.0)
    else:
        h = jax.nn.gelu(h, approximate=False)
    mlp_out = jnp.einsum('dm,bpm->bpd', params['W_out'], h) + params['b_out']
    return x1 + mlp_out


def init_params(key, d_model, d_mlp, d_head, num_heads):
    ks = jax.random.split(key, 6)
    s = 1.0 / math.sqrt(d_model)
    return {
        'W_K': jax.random.normal(ks[0], (num_heads, d_head, d_model), jnp.float32) * s,
        'W_Q': jax.random.normal(ks[1], (num_heads, d_head, d_model), jnp.float32) * s,
        'W_V': jax.random.normal(ks[2], (num_heads, d_head, d_model), jnp.float32) * s,
        'W_O': jax.random.normal(ks[3], (d_model, d_head * num_heads), jnp.float32) * s,
        'W_in': jax.random.normal(ks[4], (d_mlp, d_model), jnp.float32) * s,
        'b_in': jnp.zeros((d_mlp,), jnp.float32),
        'W_out': jax.random.normal(ks[5], (d_model, d_mlp), jnp.float32) * s,
        'b_out': jnp.zeros((d_model,), jnp.float32),
    }


if __name__ == "__main__":
    B, P, d_model = 2, 8, 32
    num_heads, d_head, d_mlp = 4, 8, 64
    act_type = 'GeLU'

    key = jax.random.PRNGKey(0)
    kx, kp = jax.random.split(key)
    x = jax.random.normal(kx, (B, P, d_model), jnp.float32)
    params = init_params(kp, d_model, d_mlp, d_head, num_heads)

    out = transformer_block(x, params, act_type=act_type)
    out = jax.block_until_ready(out)

    ref = transformer_block_ref(x, params, act_type=act_type)
    assert out.shape == (B, P, d_model)
    # bf16 MXU math + approx reciprocal + tanh-GeLU -> compare against f32/erf loosely.
    assert jnp.allclose(out, ref, rtol=5e-2, atol=5e-2), (
        f"max abs err {jnp.max(jnp.abs(out - ref))}")

    print("KERNEL_OK")
</pallas_src>

<mosaic_0001>
module attributes {stable_mosaic.version = 11 : i64} {
  func.func @_qkv_kernel(%arg0: i32, %arg1: i32, %arg2: memref<1x8x128xf32, #tpu.memory_space<vmem>>, %arg3: memref<128x1536xbf16, #tpu.memory_space<vmem>>, %arg4: memref<1x4x8x128xbf16, #tpu.memory_space<vmem>>, %arg5: memref<1x4x8x128xbf16, #tpu.memory_space<vmem>>, %arg6: memref<1x4x8x128xbf16, #tpu.memory_space<vmem>>) attributes {dimension_semantics = [#tpu.dimension_semantics<parallel>, #tpu.dimension_semantics<parallel>], iteration_bounds = array<i64: 2, 1>, scalar_prefetch = 0 : i64, scratch_operands = 0 : i64, tpu.core_type = #tpu.core_type<tc>, window_params = [{transform_indices = @transform_0, window_bounds = array<i64: 1, 8, 128>}, {pipeline_mode = #tpu.pipeline_mode<synchronous>, transform_indices = @transform_1, window_bounds = array<i64: 128, 1536>}, {transform_indices = @transform_2, window_bounds = array<i64: 1, 4, 8, 128>}, {transform_indices = @transform_3, window_bounds = array<i64: 1, 4, 8, 128>}, {transform_indices = @transform_4, window_bounds = array<i64: 1, 4, 8, 128>}]} {
    %c0 = arith.constant 0 : index
    %c0_0 = arith.constant 0 : index
    %c0_1 = arith.constant 0 : index
    %0 = vector.load %arg2[%c0, %c0_0, %c0_1] : memref<1x8x128xf32, #tpu.memory_space<vmem>>, vector<1x8x128xf32>
    %1 = vector.shape_cast %0 : vector<1x8x128xf32> to vector<8x128xf32>
    %2 = arith.truncf %1 : vector<8x128xf32> to vector<8x128xbf16>
    %c0_2 = arith.constant 0 : index
    %c0_3 = arith.constant 0 : index
    %3 = vector.load %arg3[%c0_2, %c0_3] : memref<128x1536xbf16, #tpu.memory_space<vmem>>, vector<128x1536xbf16>
    %cst = arith.constant dense<0.000000e+00> : vector<8x1536xf32>
    %4 = tpu.matmul %2, %3, %cst {dimension_numbers = #tpu.dot_dimension_numbers<[1], [0], [0], [1], [0, 0, 1, 1], [], []>} : vector<8x128xbf16>, vector<128x1536xbf16>, vector<8x1536xf32> -> vector<8x1536xf32>
    %5 = vector.extract_strided_slice %4 {offsets = [0, 0], sizes = [8, 512], strides = [1, 1]} : vector<8x1536xf32> to vector<8x512xf32>
    %6 = arith.truncf %5 : vector<8x512xf32> to vector<8x512xbf16>
    %7 = vector.shape_cast %6 : vector<8x512xbf16> to vector<8x4x128xbf16>
    %8 = tpu.transpose %7, [1, 0, 2] : vector<8x4x128xbf16> -> vector<4x8x128xbf16>
    %c0_4 = arith.constant 0 : index
    %c0_5 = arith.constant 0 : index
    %c0_6 = arith.constant 0 : index
    %c0_7 = arith.constant 0 : index
    %9 = vector.load %arg4[%c0_4, %c0_5, %c0_6, %c0_7] : memref<1x4x8x128xbf16, #tpu.memory_space<vmem>>, vector<1x4x8x128xbf16>
    %10 = vector.shape_cast %9 : vector<1x4x8x128xbf16> to vector<4x8x128xbf16>
    %11 = vector.shape_cast %8 : vector<4x8x128xbf16> to vector<1x4x8x128xbf16>
    tpu.vector_store %arg4[%c0_4, %c0_5, %c0_6, %c0_7], %11 {strides = array<i32>} : memref<1x4x8x128xbf16, #tpu.memory_space<vmem>>, vector<1x4x8x128xbf16>,
    %12 = vector.extract_strided_slice %4 {offsets = [0, 512], sizes = [8, 512], strides = [1, 1]} : vector<8x1536xf32> to vector<8x512xf32>
    %13 = arith.truncf %12 : vector<8x512xf32> to vector<8x512xbf16>
    %14 = vector.shape_cast %13 : vector<8x512xbf16> to vector<8x4x128xbf16>
    %15 = tpu.transpose %14, [1, 0, 2] : vector<8x4x128xbf16> -> vector<4x8x128xbf16>
    %c0_8 = arith.constant 0 : index
    %c0_9 = arith.constant 0 : index
    %c0_10 = arith.constant 0 : index
    %c0_11 = arith.constant 0 : index
    %16 = vector.load %arg5[%c0_8, %c0_9, %c0_10, %c0_11] : memref<1x4x8x128xbf16, #tpu.memory_space<vmem>>, vector<1x4x8x128xbf16>
    %17 = vector.shape_cast %16 : vector<1x4x8x128xbf16> to vector<4x8x128xbf16>
    %18 = vector.shape_cast %15 : vector<4x8x128xbf16> to vector<1x4x8x128xbf16>
    tpu.vector_store %arg5[%c0_8, %c0_9, %c0_10, %c0_11], %18 {strides = array<i32>} : memref<1x4x8x128xbf16, #tpu.memory_space<vmem>>, vector<1x4x8x128xbf16>,
    %19 = vector.extract_strided_slice %4 {offsets = [0, 1024], sizes = [8, 512], strides = [1, 1]} : vector<8x1536xf32> to vector<8x512xf32>
    %20 = arith.truncf %19 : vector<8x512xf32> to vector<8x512xbf16>
    %21 = vector.shape_cast %20 : vector<8x512xbf16> to vector<8x4x128xbf16>
    %22 = tpu.transpose %21, [1, 0, 2] : vector<8x4x128xbf16> -> vector<4x8x128xbf16>
    %c0_12 = arith.constant 0 : index
    %c0_13 = arith.constant 0 : index
    %c0_14 = arith.constant 0 : index
    %c0_15 = arith.constant 0 : index
    %23 = vector.load %arg6[%c0_12, %c0_13, %c0_14, %c0_15] : memref<1x4x8x128xbf16, #tpu.memory_space<vmem>>, vector<1x4x8x128xbf16>
    %24 = vector.shape_cast %23 : vector<1x4x8x128xbf16> to vector<4x8x128xbf16>
    %25 = vector.shape_cast %22 : vector<4x8x128xbf16> to vector<1x4x8x128xbf16>
    tpu.vector_store %arg6[%c0_12, %c0_13, %c0_14, %c0_15], %25 {strides = array<i32>} : memref<1x4x8x128xbf16, #tpu.memory_space<vmem>>, vector<1x4x8x128xbf16>,
    return
  }
  func.func @transform_0(%arg0: i32, %arg1: i32) -> (i32, i32, i32) {
    %c0_i32 = arith.constant 0 : i32
    %c0_i32_0 = arith.constant 0 : i32
    return %arg0, %arg1, %c0_i32 : i32, i32, i32
  }
  func.func @transform_1(%arg0: i32, %arg1: i32) -> (i32, i32) {
    %c0_i32 = arith.constant 0 : i32
    %c0_i32_0 = arith.constant 0 : i32
    %c0_i32_1 = arith.constant 0 : i32
    return %c0_i32, %c0_i32_0 : i32, i32
  }
  func.func @transform_2(%arg0: i32, %arg1: i32) -> (i32, i32, i32, i32) {
    %c0_i32 = arith.constant 0 : i32
    %c0_i32_0 = arith.constant 0 : i32
    %c0_i32_1 = arith.constant 0 : i32
    return %arg0, %c0_i32, %arg1, %c0_i32_0 : i32, i32, i32, i32
  }
  func.func @transform_3(%arg0: i32, %arg1: i32) -> (i32, i32, i32, i32) {
    %c0_i32 = arith.constant 0 : i32
    %c0_i32_0 = arith.constant 0 : i32
    %c0_i32_1 = arith.constant 0 : i32
    return %arg0, %c0_i32, %arg1, %c0_i32_0 : i32, i32, i32, i32
  }
  func.func @transform_4(%arg0: i32, %arg1: i32) -> (i32, i32, i32, i32) {
    %c0_i32 = arith.constant 0 : i32
    %c0_i32_0 = arith.constant 0 : i32
    %c0_i32_1 = arith.constant 0 : i32
    return %arg0, %c0_i32, %arg1, %c0_i32_0 : i32, i32, i32, i32
  }
}

module attributes {stable_mosaic.version = 11 : i64} {
  func.func @_qkv_kernel(%arg0: i32, %arg1: i32, %arg2: memref<1x8x128xf32, #tpu.memory_space<vmem>>, %arg3: memref<128x1536xbf16, #tpu.memory_space<vmem>>, %arg4: memref<1x4x8x128xbf16, #tpu.memory_space<vmem>>, %arg5: memref<1x4x8x128xbf16, #tpu.memory_space<vmem>>, %arg6: memref<1x4x8x128xbf16, #tpu.memory_space<vmem>>) attributes {dimension_semantics = [#tpu.dimension_semantics<parallel>, #tpu.dimension_semantics<parallel>], iteration_bounds = array<i64: 2, 1>, scalar_prefetch = 0 : i64, scratch_operands = 0 : i64, tpu.core_type = #tpu.core_type<tc>, window_params = [{transform_indices = @transform_0, window_bounds = array<i64: 1, 8, 128>}, {pipeline_mode = #tpu.pipeline_mode<synchronous>, transform_indices = @transform_1, window_bounds = array<i64: 128, 1536>}, {transform_indices = @transform_2, window_bounds = array<i64: 1, 4, 8, 128>}, {transform_indices = @transform_3, window_bounds = array<i64: 1, 4, 8, 128>}, {transform_indices = @transform_4, window_bounds = array<i64: 1, 4, 8, 128>}]} {
    %c0 = arith.constant 0 : index
    %c0_0 = arith.constant 0 : index
    %c0_1 = arith.constant 0 : index
    %0 = vector.load %arg2[%c0, %c0_0, %c0_1] : memref<1x8x128xf32, #tpu.memory_space<vmem>>, vector<1x8x128xf32>
    %1 = vector.shape_cast %0 : vector<1x8x128xf32> to vector<8x128xf32>
    %2 = arith.truncf %1 : vector<8x128xf32> to vector<8x128xbf16>
    %c0_2 = arith.constant 0 : index
    %c0_3 = arith.constant 0 : index
    %3 = vector.load %arg3[%c0_2, %c0_3] : memref<128x1536xbf16, #tpu.memory_space<vmem>>, vector<128x1536xbf16>
    %cst = arith.constant dense<0.000000e+00> : vector<8x1536xf32>
    %4 = tpu.matmul %2, %3, %cst {dimension_numbers = #tpu.dot_dimension_numbers<[1], [0], [0], [1], [0, 0, 1, 1], [], []>} : vector<8x128xbf16>, vector<128x1536xbf16>, vector<8x1536xf32> -> vector<8x1536xf32>
    %5 = vector.extract_strided_slice %4 {offsets = [0, 0], sizes = [8, 512], strides = [1, 1]} : vector<8x1536xf32> to vector<8x512xf32>
    %6 = arith.truncf %5 : vector<8x512xf32> to vector<8x512xbf16>
    %7 = vector.shape_cast %6 : vector<8x512xbf16> to vector<8x4x128xbf16>
    %8 = tpu.transpose %7, [1, 0, 2] : vector<8x4x128xbf16> -> vector<4x8x128xbf16>
    %c0_4 = arith.constant 0 : index
    %c0_5 = arith.constant 0 : index
    %c0_6 = arith.constant 0 : index
    %c0_7 = arith.constant 0 : index
    %9 = vector.load %arg4[%c0_4, %c0_5, %c0_6, %c0_7] : memref<1x4x8x128xbf16, #tpu.memory_space<vmem>>, vector<1x4x8x128xbf16>
    %10 = vector.shape_cast %9 : vector<1x4x8x128xbf16> to vector<4x8x128xbf16>
    %11 = vector.shape_cast %8 : vector<4x8x128xbf16> to vector<1x4x8x128xbf16>
    tpu.vector_store %arg4[%c0_4, %c0_5, %c0_6, %c0_7], %11 {strides = array<i32>} : memref<1x4x8x128xbf16, #tpu.memory_space<vmem>>, vector<1x4x8x128xbf16>,
    %12 = vector.extract_strided_slice %4 {offsets = [0, 512], sizes = [8, 512], strides = [1, 1]} : vector<8x1536xf32> to vector<8x512xf32>
    %13 = arith.truncf %12 : vector<8x512xf32> to vector<8x512xbf16>
    %14 = vector.shape_cast %13 : vector<8x512xbf16> to vector<8x4x128xbf16>
    %15 = tpu.transpose %14, [1, 0, 2] : vector<8x4x128xbf16> -> vector<4x8x128xbf16>
    %c0_8 = arith.constant 0 : index
    %c0_9 = arith.constant 0 : index
    %c0_10 = arith.constant 0 : index
    %c0_11 = arith.constant 0 : index
    %16 = vector.load %arg5[%c0_8, %c0_9, %c0_10, %c0_11] : memref<1x4x8x128xbf16, #tpu.memory_space<vmem>>, vector<1x4x8x128xbf16>
    %17 = vector.shape_cast %16 : vector<1x4x8x128xbf16> to vector<4x8x128xbf16>
    %18 = vector.shape_cast %15 : vector<4x8x128xbf16> to vector<1x4x8x128xbf16>
    tpu.vector_store %arg5[%c0_8, %c0_9, %c0_10, %c0_11], %18 {strides = array<i32>} : memref<1x4x8x128xbf16, #tpu.memory_space<vmem>>, vector<1x4x8x128xbf16>,
    %19 = vector.extract_strided_slice %4 {offsets = [0, 1024], sizes = [8, 512], strides = [1, 1]} : vector<8x1536xf32> to vector<8x512xf32>
    %20 = arith.truncf %19 : vector<8x512xf32> to vector<8x512xbf16>
    %21 = vector.shape_cast %20 : vector<8x512xbf16> to vector<8x4x128xbf16>
    %22 = tpu.transpose %21, [1, 0, 2] : vector<8x4x128xbf16> -> vector<4x8x128xbf16>
    %c0_12 = arith.constant 0 : index
    %c0_13 = arith.constant 0 : index
    %c0_14 = arith.constant 0 : index
    %c0_15 = arith.constant 0 : index
    %23 = vector.load %arg6[%c0_12, %c0_13, %c0_14, %c0_15] : memref<1x4x8x128xbf16, #tpu.memory_space<vmem>>, vector<1x4x8x128xbf16>
    %24 = vector.shape_cast %23 : vector<1x4x8x128xbf16> to vector<4x8x128xbf16>
    %25 = vector.shape_cast %22 : vector<4x8x128xbf16> to vector<1x4x8x128xbf16>
    tpu.vector_store %arg6[%c0_12, %c0_13, %c0_14, %c0_15], %25 {strides = array<i32>} : memref<1x4x8x128xbf16, #tpu.memory_space<vmem>>, vector<1x4x8x128xbf16>,
    return
  }
  func.func @transform_0(%arg0: i32, %arg1: i32) -> (i32, i32, i32) {
    %c0_i32 = arith.constant 0 : i32
    %c0_i32_0 = arith.constant 0 : i32
    return %arg0, %arg1, %c0_i32 : i32, i32, i32
  }
  func.func @transform_1(%arg0: i32, %arg1: i32) -> (i32, i32) {
    %c0_i32 = arith.constant 0 : i32
    %c0_i32_0 = arith.constant 0 : i32
    %c0_i32_1 = arith.constant 0 : i32
    return %c0_i32, %c0_i32_0 : i32, i32
  }
  func.func @transform_2(%arg0: i32, %arg1: i32) -> (i32, i32, i32, i32) {
    %c0_i32 = arith.constant 0 : i32
    %c0_i32_0 = arith.constant 0 : i32
    %c0_i32_1 = arith.constant 0 : i32
    return %arg0, %c0_i32, %arg1, %c0_i32_0 : i32, i32, i32, i32
  }
  func.func @transform_3(%arg0: i32, %arg1: i32) -> (i32, i32, i32, i32) {
    %c0_i32 = arith.constant 0 : i32
    %c0_i32_0 = arith.constant 0 : i32
    %c0_i32_1 = arith.constant 0 : i32
    return %arg0, %c0_i32, %arg1, %c0_i32_0 : i32, i32, i32, i32
  }
  func.func @transform_4(%arg0: i32, %arg1: i32) -> (i32, i32, i32, i32) {
    %c0_i32 = arith.constant 0 : i32
    %c0_i32_0 = arith.constant 0 : i32
    %c0_i32_1 = arith.constant 0 : i32
    return %arg0, %c0_i32, %arg1, %c0_i32_0 : i32, i32, i32, i32
  }
}

</mosaic_0001>

<bundles_post_ra>
// kernel: tpu_custom_call.1
= control target key start
LH: loop header
LB: loop body
LE: loop exit
PB: predicated region body
PF: predicated region fallthrough
CT: control target
= control target key end

     0   :  { %10 = vsyncpa [#allocation3], 0  ;;  %s2798_s0 = inlined_call_operand.hbm [shape: f32[2,8,128], index: 0, kind: input, shape index: {}]   ;;  %s2799_s1 = inlined_call_operand.hbm [shape: bf16[128,1536], index: 1, kind: input, shape index: {}]   ;;  %s2800_s2 = inlined_call_operand.hbm [shape: bf16[2,4,8,128], index: 2, kind: output, shape index: {0}]   ;;  %s2801_s3 = inlined_call_operand.hbm [shape: bf16[2,4,8,128], index: 3, kind: output, shape index: {1}]   ;;  %s2802_s4 = inlined_call_operand.hbm [shape: bf16[2,4,8,128], index: 4, kind: output, shape index: {2}]  }
   0x1   :  { %12 = vsyncpa [#allocation3 + $0x1], 0 }
   0x2   :  { %13 = vsyncpa [#allocation6], 0 }
   0x3   :  { %14 = vsyncpa [#allocation4], 0 }
   0x4   :  { %16 = vsyncpa [#allocation4 + $0x1], 0 }
   0x5   :  { %17 = vsyncpa [#allocation9], 0 }
   0x6   :  { %19 = vsyncpa [#allocation9 + $0x1], 0  ;;  %s2420_s15 = smov 0   ;;  %s2422_s16 = smov 0  }
   0x7   :  { %s2424_s17 = smov 0   ;;  %s2426_s18 = smov 0  }
   0x8   :  { %s2428_s19 = smov 0   ;;  %s2430_s20 = smov 0  }
   0x9 LB: > { %s2451_s21 = sadd.s32 4294967295, %s2381_s20   ;;  %s1821_s22 = sadd.s32 4294967294, %s2381_s20   ;;  %s2381_s20 = sphi %s2430_s20, %s25_s20   ;;  %s2377_s19 = sphi %s2428_s19, %s2824_s19   ;;  %s2373_s18 = sphi %s2426_s18, %s2823_s18   ;;  %s2369_s17 = sphi %s2424_s17, %s2822_s17   ;;  %s2365_s16 = sphi %s2422_s16, %s2821_s16   ;;  %s2361_s15 = sphi %s2420_s15, %s2820_s15  }
   0xa   : > { %p59_p0 = scmp.ne.s32.totalorder %s2365_s16, %s2361_s15  ;;  %p2803_p1 = scmp.eq.s32.totalorder %s2451_s21, 0 }
   0xb   : > { %p112_p3 = scmp.eq.s32.totalorder %s1821_s22, 1  ;;  %p1822_p5 = scmp.ge.s32.totalorder %s2381_s20, 1 }
   0xc   : > { %p2462_p4 = por %p2803_p1, %p59_p0  ;;  %p175_p7 = scmp.lt.s32.totalorder %s2381_s20, 3 }
   0xd   : > { %p2467_p6 = por %p112_p3, %p59_p0  ;;  %s2383_s26 = smov [#allocation5]  }
   0xe   : > { %s2806_s23 = scalar_select %p2462_p4, 1, 0 }
   0xf   : > { %s2807_s24 = scalar_select %p2467_p6, 1, 0 }
  0x10   : > { %p2472_p8 = pnand %p1822_p5, %p175_p7  ;;  %s187_s27 = sshll.u32 %s2383_s26, 4  ;;  %s188_s27 = int_to_ptr.vmem [resolvable:$true] %s187_s27 }
  0x11   : > { %s37_s29 = sadd.s32 1, %s2377_s19  ;;  %s2177_s6 = scalar_lea.hbm %s2799_s1, 12288 }
  0x12   : > { %s2808_s25 = scalar_select %p2472_p8, 1, 0 }
  0x13   : > { %p1955_p9 = pneg %p2472_p8  ;;  %p2178_p12 = scmp.ne.s32.totalorder %s2799_s1, %s2177_s6 }
  0x14   : > { %p2184_p5 = scmp.lt.u32.totalorder %s2177_s6, %s2799_s1 }
  0x15   : > { %p2481_p11 = pnand %p1955_p9, %p2803_p1 }
  0x17   : > { %p2179_p13 = pneg %p2481_p11 }
  0x19   : > { %p2180_p0 = pnand %p2179_p13, %p2178_p12 }
  0x1b   : > { %p2181_p3 = pneg %p2180_p0 }
  0x1d   : > { %p2186_p7 = pnand %p2184_p5, %p2181_p3 }
  0x1f   : > { %2189 = shalt.err (!%p2186_p7)
}
  0x20   : > { %s2190_s11 = scalar_lea.vmem %s188_s27, 12288  ;;  %p2198_p2 = scmp.lt.s32.totalorder %s188_s27, %s188_s27 }
  0x21   : > { %p2191_p9 = scmp.ne.s32.totalorder %s188_s27, %s2190_s11  ;;  %p2199_p6 = scmp.lt.s32.totalorder %s2190_s11, %s2190_s11 }
  0x23   : > { %p2193_p10 = pnand %p2191_p9, %p2179_p13  ;;  %p2200_p4 = por %p2199_p6, %p2198_p2 }
  0x25   : > { %p2194_p1 = pneg %p2193_p10 }
  0x27   : > { %p2201_p8 = pnand %p2200_p4, %p2194_p1 }
  0x29   : > { %2204 = shalt.err (!%p2201_p8)
}
  0x2a   : > { %s2384_s12 = smov 768   ;;  %s2385_s13 = smov 48  }
  0x2b   : > { %1958 = dma.hbm_to_vmem [thread:$0]  (!%p2481_p11), %s2799_s1, 12288, %s188_s27, [#allocation6], %s2384_s12, %s2384_s12, %s2385_s13  }
  0x2c   : > { %p39_p1 = scmp.ge.s32.totalorder %s37_s29, 2  ;;  %s46_s30 = sadd.s32 1, %s2369_s17 }
  0x2d   : > { %p53_p2 = scmp.ne.s32.totalorder %s2369_s17, %s2365_s16  ;;  %p54_p4 = scmp.eq.s32.totalorder %s2381_s20, 0 }
  0x2e   : > { %s2826_s29 = smov (%p39_p1, %s37_s29), 0  ;;  %p2811_p8 = scmp.eq.s32.totalorder %s2451_s21, 1 }
  0x2f   : > { %p2508_p6 = por %p54_p4, %p53_p2  ;;  %s41_s28 = ssub.s32 %s2377_s19, %s2826_s29 }
  0x30   : > { %p2514_p10 = por %p2811_p8, %p53_p2  ;;  %p1974_p12 = scmp.lt.s32.totalorder %s2381_s20, 2 }
  0x31   : > { %p44_p11 = scmp.eq.s32.totalorder %s41_s28, 0  ;;  %s201_s27 = sand.u32 1, %s2369_s17  }
  0x32   : > { %s1825_s7 = sshll.u32 %s201_s27, 3  ;;  %s1826_s9 = sshll.u32 %s2377_s19, 7 }
  0x33   : > { %s2523_s8 = scalar_select %p44_p11, %s2369_s17, %s46_s30  }
  0x34   : > { %s2529_s12 = scalar_lea.hbm %s2798_s0, %s1826_s9  ;;  %s205_s13 = scalar_lea.vmem [#allocation2], %s1825_s7 }
  0x35   : > { %s213_s14 = sshll.u32 %s205_s13, 4  ;;  %p2535_p13 = pnand %p1974_p12, %p2508_p6  ;;  %s2531_s14 = int_to_ptr.vmem [resolvable:$true] %s213_s14 }
  0x36   : > { %s202_s30 = scalar_lea.sflag [#allocation3], %s201_s27  ;;  %s2205_s28 = scalar_lea.hbm %s2529_s12, 128 }
  0x37   : > { %p2206_p0 = scmp.ne.s32.totalorder %s2529_s12, %s2205_s28  ;;  %p2207_p3 = pneg %p2535_p13 }
  0x38   : > { %s2210_s10 = scalar_lea.hbm %s2798_s0, 256  ;;  %p2211_p9 = scmp.lt.u32.totalorder %s2529_s12, %s2798_s0 }
  0x39   : > { %p2208_p5 = pnand %p2207_p3, %p2206_p0  ;;  %p2212_p1 = scmp.lt.u32.totalorder %s2210_s10, %s2205_s28 }
  0x3a   : > { %p2214_p4 = scmp.lt.u32.totalorder %s2205_s28, %s2529_s12 }
  0x3b   : > { %p2209_p7 = pneg %p2208_p5  ;;  %p2213_p2 = por %p2212_p1, %p2211_p9 }
  0x3d   : > { %p2215_p6 = por %p2214_p4, %p2213_p2 }
  0x3f   : > { %p2216_p8 = pnand %p2215_p6, %p2209_p7 }
  0x41   : > { %2219 = shalt.err (!%p2216_p8)
}
  0x42   : > { %s2220_s27 = scalar_lea.vmem %s2531_s14, 128  ;;  %s2386_s13 = smov [#allocation2]  }
  0x43   : > { %p2221_p12 = scmp.ne.s32.totalorder %s2531_s14, %s2220_s27  ;;  %s2225_s7 = sshll.u32 %s2386_s13, 4  ;;  %s2226_s7 = int_to_ptr.vmem [resolvable:$false] %s2225_s7 }
  0x44   : > { %s2227_s9 = scalar_lea.vmem %s2226_s7, 256  ;;  %p2228_p5 = scmp.lt.s32.totalorder %s2531_s14, %s2226_s7 }
  0x45   : > { %p2223_p11 = pnand %p2221_p12, %p2207_p3  ;;  %p2229_p9 = scmp.lt.s32.totalorder %s2227_s9, %s2220_s27 }
  0x47   : > { %p2224_p0 = pneg %p2223_p11  ;;  %p2230_p1 = por %p2229_p9, %p2228_p5 }
  0x49   : > { %p2231_p2 = pnand %p2230_p1, %p2224_p0 }
  0x4b   : > { %2234 = shalt.err (!%p2231_p2)
}
  0x4c   : > { %1962 = dma.hbm_to_vmem [thread:$0]  (!%p2535_p13), %s2529_s12, 128, %s2531_s14, %s202_s30  }
  0x4d   : > { %p2814_p7 = scmp.ne.s32.totalorder %s2808_s25, 0 }
  0x4e   : > { %s2567_s28 = sand.u32 (!%p2814_p7), 1, %s2365_s16   ;;  %p2815_p3 = scmp.ne.s32.totalorder (!%p2814_p7), %s2806_s23, 0 }
  0x4f   : > { %222 = sbr.rel (%p2814_p7) target bundleno = 467 (0x1d3), region = 28  ;;  %s1828_s10 = sshll.u32 (!%p2814_p7), %s2567_s28, 3 }
  0x50   : > { %s225_s5 = scalar_lea.sflag (!%p2814_p7), [#allocation3], %s2567_s28  ;;  %s2571_s11 = scalar_lea.vmem (!%p2814_p7), [#allocation2], %s1828_s10 }
  0x56   : > { %2344 = dma.done.wait (%p2815_p3), %s225_s5, 128  }
  0x57   : > { %2346 = vsyncadd (%p2815_p3), %s225_s5, 4294967168  ;;  %p2816_p13 = scmp.eq.s32.totalorder %s2451_s21, 0 }
  0x59   : > { %2348 = dma.done.wait (%p2816_p13), [#allocation6], 12288   ;;  %p2817_p4 = pmov %p2816_p13 }
  0x5a   : > { %v2387_v0 = vmov 0   ;;  %v2033_v1 = vld [vmem:[#allocation5 + $0x4] ss:$48 sps:$4 sm:$0xff]   ;;  %v2035_v2 = vld [vmem:[#allocation5 + $0xc] ss:$48 sps:$4 sm:$0xff]   ;;  %s2618_s23 = sshll.u32 %s2567_s28, 4 }
  0x5b   : > { %2350 = vsyncadd (%p2817_p4), [#allocation6], 4294955008  ;;  %878 = vmatprep.mubr.bf16.mxu0 %v2387_v0  ;;  %919 = vmatprep.mubr.bf16.mxu1 %v2387_v0  ;;  %v2037_v3 = vld [vmem:[#allocation5] ss:$48 sps:$4 sm:$0xff]   ;;  %v2038_v4 = vld [vmem:[#allocation5 + $0x8] ss:$48 sps:$4 sm:$0xff]  }
  0x5c   : > { %846 = vmatprep.subr.bf16.mxu0 %v2033_v1  ;;  %887 = vmatprep.subr.bf16.mxu1 %v2035_v2  ;;  %v2039_v5 = vld [vmem:[#allocation5 + $0x64] ss:$48 sps:$4 sm:$0xff]   ;;  %v2041_v6 = vld [vmem:[#allocation5 + $0x6c] ss:$48 sps:$4 sm:$0xff]   ;;  %v2043_v7 = vld [vmem:[#allocation5 + $0x60] ss:$48 sps:$4 sm:$0xff]  }
  0x5d   : > { %847 = vmatpush1.bf16.msra.mxu0 %v2037_v3  ;;  %888 = vmatpush1.bf16.msra.mxu1 %v2038_v4  ;;  %v2044_v8 = vld [vmem:[#allocation5 + $0x68] ss:$48 sps:$4 sm:$0xff]   ;;  %v2045_v9 = vld [vmem:[#allocation5 + $0xc4] ss:$48 sps:$4 sm:$0xff]   ;;  %v2047_v10 = vld [vmem:[#allocation5 + $0xcc] ss:$48 sps:$4 sm:$0xff]  }
  0x5e   : > { %848 = vmatprep.subr.bf16.mxu0 %v2039_v5  ;;  %889 = vmatprep.subr.bf16.mxu1 %v2041_v6  ;;  %v2049_v11 = vld [vmem:[#allocation5 + $0xc0] ss:$48 sps:$4 sm:$0xff]   ;;  %v2050_v12 = vld [vmem:[#allocation5 + $0xc8] ss:$48 sps:$4 sm:$0xff]   ;;  %v2051_v13 = vld [vmem:[#allocation5 + $0x124] ss:$48 sps:$4 sm:$0xff]  }
  0x5f   : > { %v2053_v14 = vld [vmem:[#allocation5 + $0x12c] ss:$48 sps:$4 sm:$0xff]   ;;  %v2055_v15 = vld [vmem:[#allocation5 + $0x120] ss:$48 sps:$4 sm:$0xff]   ;;  %v2056_v16 = vld [vmem:[#allocation5 + $0x128] ss:$48 sps:$4 sm:$0xff]  }
  0x60   : > { %v2057_v17 = vld [vmem:[#allocation5 + $0x184] ss:$48 sps:$4 sm:$0xff]   ;;  %v2059_v18 = vld [vmem:[#allocation5 + $0x18c] ss:$48 sps:$4 sm:$0xff]   ;;  %v2061_v19 = vld [vmem:[#allocation5 + $0x180] ss:$48 sps:$4 sm:$0xff]  }
  0x61   : > { %849 = vmatpush1.bf16.msra.mxu0 %v2043_v7  ;;  %890 = vmatpush1.bf16.msra.mxu1 %v2044_v8  ;;  %v2062_v20 = vld [vmem:[#allocation5 + $0x188] ss:$48 sps:$4 sm:$0xff]   ;;  %v2063_v21 = vld [vmem:[#allocation5 + $0x1e4] ss:$48 sps:$4 sm:$0xff]   ;;  %v2065_v22 = vld [vmem:[#allocation5 + $0x1ec] ss:$48 sps:$4 sm:$0xff]  }
  0x62   : > { %850 = vmatprep.subr.bf16.mxu0 %v2045_v9  ;;  %891 = vmatprep.subr.bf16.mxu1 %v2047_v10  ;;  %v2067_v23 = vld [vmem:[#allocation5 + $0x1e0] ss:$48 sps:$4 sm:$0xff]   ;;  %v2068_v24 = vld [vmem:[#allocation5 + $0x1e8] ss:$48 sps:$4 sm:$0xff]   ;;  %v2069_v25 = vld [vmem:[#allocation5 + $0x244] ss:$48 sps:$4 sm:$0xff]  }
  0x63   : > { %v2071_v26 = vld [vmem:[#allocation5 + $0x24c] ss:$48 sps:$4 sm:$0xff]   ;;  %v2073_v27 = vld [vmem:[#allocation5 + $0x240] ss:$48 sps:$4 sm:$0xff]   ;;  %v2074_v28 = vld [vmem:[#allocation5 + $0x248] ss:$48 sps:$4 sm:$0xff]  }
  0x64   : > { %v2075_v29 = vld [vmem:[#allocation5 + $0x2a4] ss:$48 sps:$4 sm:$0xff]   ;;  %v2077_v30 = vld [vmem:[#allocation5 + $0x2ac] ss:$48 sps:$4 sm:$0xff]   ;;  %v2079_v31 = vld [vmem:[#allocation5 + $0x2a0] ss:$48 sps:$4 sm:$0xff]  }
  0x65   : > { %851 = vmatpush1.bf16.msra.mxu0 %v2049_v11  ;;  %892 = vmatpush1.bf16.msra.mxu1 %v2050_v12  ;;  %v2080_v32 = vld [vmem:[#allocation5 + $0x2a8] ss:$48 sps:$4 sm:$0xff]   ;;  %v2083_v34 = vld [vmem:[#allocation5 + $0x14] ss:$48 sps:$4 sm:$0xff]   ;;  %v2086_v35 = vld [vmem:[#allocation5 + $0x1c] ss:$48 sps:$4 sm:$0xff]  }
  0x66   : > { %852 = vmatprep.subr.bf16.mxu0 %v2051_v13  ;;  %893 = vmatprep.subr.bf16.mxu1 %v2053_v14  ;;  %v268_v33 = vld [vmem:[%s2571_s11] sm:$0xff]  ;;  %s2624_s25 = sshll.u32 %s2373_s18, 8  ;;  %s252_s12 = scalar_lea.vmem [#allocation7], %s2618_s23 }
  0x67   : > { %v2584_v36 = vpack.c.bf16 %v268_v33, %v268_v33  ;;  %v2081_v37 = vld [vmem:[#allocation5 + $0x10] ss:$48 sps:$4 sm:$0xff]   ;;  %v2084_v38 = vld [vmem:[#allocation5 + $0x18] ss:$48 sps:$4 sm:$0xff]   ;;  %v2089_v39 = vld [vmem:[#allocation5 + $0x74] ss:$48 sps:$4 sm:$0xff]   ;;  %s2631_s27 = scalar_lea.hbm %s2800_s2, %s2624_s25 }
  0x68   : > { %v2092_v40 = vld [vmem:[#allocation5 + $0x7c] ss:$48 sps:$4 sm:$0xff]   ;;  %v2087_v41 = vld [vmem:[#allocation5 + $0x70] ss:$48 sps:$4 sm:$0xff]   ;;  %v2090_v42 = vld [vmem:[#allocation5 + $0x78] ss:$48 sps:$4 sm:$0xff]  }
  0x69   : > { %853 = vmatpush1.bf16.msra.mxu0 %v2055_v15  ;;  %894 = vmatpush1.bf16.msra.mxu1 %v2056_v16  ;;  %v2095_v43 = vld [vmem:[#allocation5 + $0xd4] ss:$48 sps:$4 sm:$0xff]   ;;  %v2098_v44 = vld [vmem:[#allocation5 + $0xdc] ss:$48 sps:$4 sm:$0xff]   ;;  %v2093_v45 = vld [vmem:[#allocation5 + $0xd0] ss:$48 sps:$4 sm:$0xff]  }
  0x6a   : > { %854 = vmatprep.subr.bf16.mxu0 %v2057_v17  ;;  %895 = vmatprep.subr.bf16.mxu1 %v2059_v18  ;;  %v2096_v46 = vld [vmem:[#allocation5 + $0xd8] ss:$48 sps:$4 sm:$0xff]   ;;  %v2101_v47 = vld [vmem:[#allocation5 + $0x134] ss:$48 sps:$4 sm:$0xff]   ;;  %v2104_v48 = vld [vmem:[#allocation5 + $0x13c] ss:$48 sps:$4 sm:$0xff]  }
  0x6b   : > { %v2099_v49 = vld [vmem:[#allocation5 + $0x130] ss:$48 sps:$4 sm:$0xff]   ;;  %v2102_v50 = vld [vmem:[#allocation5 + $0x138] ss:$48 sps:$4 sm:$0xff]   ;;  %v2107_v51 = vld [vmem:[#allocation5 + $0x194] ss:$48 sps:$4 sm:$0xff]  }
  0x6c   : > { %v2110_v52 = vld [vmem:[#allocation5 + $0x19c] ss:$48 sps:$4 sm:$0xff]   ;;  %v2105_v53 = vld [vmem:[#allocation5 + $0x190] ss:$48 sps:$4 sm:$0xff]   ;;  %v2108_v54 = vld [vmem:[#allocation5 + $0x198] ss:$48 sps:$4 sm:$0xff]  }
  0x6d   : > { %855 = vmatpush1.bf16.msra.mxu0 %v2061_v19  ;;  %896 = vmatpush1.bf16.msra.mxu1 %v2062_v20  ;;  %v2113_v55 = vld [vmem:[#allocation5 + $0x1f4] ss:$48 sps:$4 sm:$0xff]   ;;  %v2116_v56 = vld [vmem:[#allocation5 + $0x1fc] ss:$48 sps:$4 sm:$0xff]   ;;  %v2111_v57 = vld [vmem:[#allocation5 + $0x1f0] ss:$48 sps:$4 sm:$0xff]  }
  0x6e   : > { %856 = vmatprep.subr.bf16.mxu0 %v2063_v21  ;;  %897 = vmatprep.subr.bf16.mxu1 %v2065_v22  ;;  %v2114_v58 = vld [vmem:[#allocation5 + $0x1f8] ss:$48 sps:$4 sm:$0xff]   ;;  %v2119_v59 = vld [vmem:[#allocation5 + $0x254] ss:$48 sps:$4 sm:$0xff]   ;;  %v2122_v60 = vld [vmem:[#allocation5 + $0x25c] ss:$48 sps:$4 sm:$0xff]  }
  0x6f   : > { %v2117_v61 = vld [vmem:[#allocation5 + $0x250] ss:$48 sps:$4 sm:$0xff]   ;;  %v2120_v62 = vld [vmem:[#allocation5 + $0x258] ss:$48 sps:$4 sm:$0xff]   ;;  %v2125_v63 = vld [vmem:[#allocation5 + $0x2b4] ss:$48 sps:$4 sm:$0xff]  }
  0x70   : > { %v2128_v1 = vld [vmem:[#allocation5 + $0x2bc] ss:$48 sps:$4 sm:$0xff]   ;;  %v2123_v2 = vld [vmem:[#allocation5 + $0x2b0] ss:$48 sps:$4 sm:$0xff]   ;;  %v2126_v3 = vld [vmem:[#allocation5 + $0x2b8] ss:$48 sps:$4 sm:$0xff]  }
  0x71   : > { %857 = vmatpush1.bf16.msra.mxu0 %v2067_v23  ;;  %898 = vmatpush1.bf16.msra.mxu1 %v2068_v24  ;;  %v2131_v4 = vld [vmem:[#allocation5 + $0x24] ss:$48 sps:$4 sm:$0xff]   ;;  %v2134_v5 = vld [vmem:[#allocation5 + $0x2c] ss:$48 sps:$4 sm:$0xff]   ;;  %v2129_v6 = vld [vmem:[#allocation5 + $0x20] ss:$48 sps:$4 sm:$0xff]  }
  0x72   : > { %858 = vmatprep.subr.bf16.mxu0 %v2069_v25  ;;  %899 = vmatprep.subr.bf16.mxu1 %v2071_v26  ;;  %v2132_v7 = vld [vmem:[#allocation5 + $0x28] ss:$48 sps:$4 sm:$0xff]   ;;  %v2137_v8 = vld [vmem:[#allocation5 + $0x84] ss:$48 sps:$4 sm:$0xff]   ;;  %v2140_v9 = vld [vmem:[#allocation5 + $0x8c] ss:$48 sps:$4 sm:$0xff]  }
  0x73   : > { %v2135_v10 = vld [vmem:[#allocation5 + $0x80] ss:$48 sps:$4 sm:$0xff]   ;;  %v2138_v11 = vld [vmem:[#allocation5 + $0x88] ss:$48 sps:$4 sm:$0xff]   ;;  %v2143_v12 = vld [vmem:[#allocation5 + $0xe4] ss:$48 sps:$4 sm:$0xff]  }
  0x74   : > { %v2146_v13 = vld [vmem:[#allocation5 + $0xec] ss:$48 sps:$4 sm:$0xff]   ;;  %v2141_v14 = vld [vmem:[#allocation5 + $0xe0] ss:$48 sps:$4 sm:$0xff]   ;;  %v2144_v15 = vld [vmem:[#allocation5 + $0xe8] ss:$48 sps:$4 sm:$0xff]  }
  0x75   : > { %859 = vmatpush1.bf16.msra.mxu0 %v2073_v27  ;;  %900 = vmatpush1.bf16.msra.mxu1 %v2074_v28  ;;  %v2149_v16 = vld [vmem:[#allocation5 + $0x144] ss:$48 sps:$4 sm:$0xff]   ;;  %v2152_v17 = vld [vmem:[#allocation5 + $0x14c] ss:$48 sps:$4 sm:$0xff]   ;;  %v2147_v18 = vld [vmem:[#allocation5 + $0x140] ss:$48 sps:$4 sm:$0xff]  }
  0x76   : > { %860 = vmatprep.subr.bf16.mxu0 %v2075_v29  ;;  %901 = vmatprep.subr.bf16.mxu1 %v2077_v30  ;;  %v2150_v19 = vld [vmem:[#allocation5 + $0x148] ss:$48 sps:$4 sm:$0xff]   ;;  %v2155_v20 = vld [vmem:[#allocation5 + $0x1a4] ss:$48 sps:$4 sm:$0xff]   ;;  %v2158_v21 = vld [vmem:[#allocation5 + $0x1ac] ss:$48 sps:$4 sm:$0xff]  }
  0x77   : > { %v2153_v22 = vld [vmem:[#allocation5 + $0x1a0] ss:$48 sps:$4 sm:$0xff]   ;;  %v2156_v23 = vld [vmem:[#allocation5 + $0x1a8] ss:$48 sps:$4 sm:$0xff]   ;;  %v2161_v24 = vld [vmem:[#allocation5 + $0x204] ss:$48 sps:$4 sm:$0xff]  }
  0x78   : > { %v2164_v25 = vld [vmem:[#allocation5 + $0x20c] ss:$48 sps:$4 sm:$0xff]   ;;  %v2159_v26 = vld [vmem:[#allocation5 + $0x200] ss:$48 sps:$4 sm:$0xff]   ;;  %v2162_v27 = vld [vmem:[#allocation5 + $0x208] ss:$48 sps:$4 sm:$0xff]  }
  0x79   : > { %861 = vmatpush1.bf16.msra.mxu0 %v2079_v31  ;;  %902 = vmatpush1.bf16.msra.mxu1 %v2080_v32  ;;  %v2167_v28 = vld [vmem:[#allocation5 + $0x264] ss:$48 sps:$4 sm:$0xff]   ;;  %v2170_v29 = vld [vmem:[#allocation5 + $0x26c] ss:$48 sps:$4 sm:$0xff]   ;;  %v2165_v30 = vld [vmem:[#allocation5 + $0x260] ss:$48 sps:$4 sm:$0xff]  }
  0x7a   : > { %928 = vmatprep.subr.bf16.mxu0 %v2083_v34  ;;  %969 = vmatprep.subr.bf16.mxu1 %v2086_v35  ;;  %v2168_v31 = vld [vmem:[#allocation5 + $0x268] ss:$48 sps:$4 sm:$0xff]   ;;  %v2173_v32 = vld [vmem:[#allocation5 + $0x2c4] ss:$48 sps:$4 sm:$0xff]   ;;  %v2176_v33 = vld [vmem:[#allocation5 + $0x2cc] ss:$48 sps:$4 sm:$0xff]  }
  0x7b   : > { %v2171_v34 = vld [vmem:[#allocation5 + $0x2c0] ss:$48 sps:$4 sm:$0xff]   ;;  %v2174_v35 = vld [vmem:[#allocation5 + $0x2c8] ss:$48 sps:$4 sm:$0xff]   ;;  %s1627_s14 = sshll.u32 %s252_s12, 4  ;;  %s1603_s18 = scalar_lea.sflag [#allocation4], %s2567_s28  ;;  %s2633_s14 = int_to_ptr.vmem [resolvable:$true] %s1627_s14 }
  0x7c   : > { %879 = vmatmul.mubr.bf16.vlgmr.msra.gmra.mrb[0].mxu0 %v2584_v36  ;;  %920 = vmatmul.mubr.bf16.vlgmr.msra.gmra.mrb[0].mxu1 %v2584_v36  ;;  %s2235_s13 = scalar_lea.vmem %s2633_s14, 256  ;;  %s2390_s7 = smov [#allocation7]  }
  0x7d   : > { %929 = vmatpush1.bf16.msra.mxu0 %v2081_v37  ;;  %970 = vmatpush1.bf16.msra.mxu1 %v2084_v38  ;;  %v2388_v37 = vmov 1983009808   ;;  %p2236_p6 = scmp.ne.s32.totalorder %s2633_s14, %s2235_s13  ;;  %s2239_s9 = sshll.u32 %s2390_s7, 4  ;;  %s2240_s9 = int_to_ptr.vmem [resolvable:$false] %s2239_s9 }
  0x7e   : > { %930 = vmatprep.subr.bf16.mxu0 %v2089_v39  ;;  %971 = vmatprep.subr.bf16.mxu1 %v2092_v40  ;;  %v1094_v38 = vunpack.c.l.s4 %v2388_v37  ;;  %v1096_v39 = vlaneseq  ;;  %s2241_s10 = scalar_lea.vmem %s2240_s9, 512  ;;  %p2242_p11 = scmp.lt.s32.totalorder %s2633_s14, %s2240_s9 }
  0x7f   : > { %960 = vmatprep.mubr.bf16.mxu0 %v2387_v0  ;;  %1001 = vmatprep.mubr.bf16.mxu1 %v2387_v0  ;;  %p2237_p8 = pnand %p2236_p6, %p2514_p10  ;;  %p2243_p0 = scmp.lt.s32.totalorder %s2241_s10, %s2235_s13 }
  0x80   : > { %v1095_v40 = vunpack.c.0.s8 %v1094_v38 }
  0x81   : > { %931 = vmatpush1.bf16.msra.mxu0 %v2087_v41  ;;  %972 = vmatpush1.bf16.msra.mxu1 %v2090_v42  ;;  %v1097_v41 = vshrl.u32 %v1096_v39, 7  ;;  %v2389_v42 = vmov 1934713408   ;;  %p2238_p12 = pneg %p2237_p8  ;;  %p2244_p5 = por %p2243_p0, %p2242_p11 }
  0x82   : > { %932 = vmatprep.subr.bf16.mxu0 %v2095_v43  ;;  %973 = vmatprep.subr.bf16.mxu1 %v2098_v44  ;;  %v1111_v43 = vunpack.c.l.s4 %v2389_v42 }
  0x83   : > { %v2596_v44 = vsub.s32 %v1095_v40, %v1097_v41  ;;  %p2245_p9 = pnand %p2244_p5, %p2238_p12 }
  0x85   : > { %933 = vmatpush1.bf16.msra.mxu0 %v2093_v45  ;;  %974 = vmatpush1.bf16.msra.mxu1 %v2096_v46  ;;  %v1112_v45 = vunpack.c.0.s8 %v1111_v43 }
  0x86   : > { %934 = vmatprep.subr.bf16.mxu0 %v2101_v47  ;;  %975 = vmatprep.subr.bf16.mxu1 %v2104_v48 }
  0x89   : > { %935 = vmatpush1.bf16.msra.mxu0 %v2099_v49  ;;  %976 = vmatpush1.bf16.msra.mxu1 %v2102_v50 }
  0x8a   : > { %936 = vmatprep.subr.bf16.mxu0 %v2107_v51  ;;  %977 = vmatprep.subr.bf16.mxu1 %v2110_v52 }
  0x8d   : > { %937 = vmatpush1.bf16.msra.mxu0 %v2105_v53  ;;  %978 = vmatpush1.bf16.msra.mxu1 %v2108_v54 }
  0x8e   : > { %938 = vmatprep.subr.bf16.mxu0 %v2113_v55  ;;  %979 = vmatprep.subr.bf16.mxu1 %v2116_v56 }
  0x91   : > { %939 = vmatpush1.bf16.msra.mxu0 %v2111_v57  ;;  %980 = vmatpush1.bf16.msra.mxu1 %v2114_v58  ;;  %v2600_v57 = vsub.s32 %v1112_v45, %v1097_v41 }
  0x92   : > { %940 = vmatprep.subr.bf16.mxu0 %v2119_v59  ;;  %981 = vmatprep.subr.bf16.mxu1 %v2122_v60 }
  0x95   : > { %941 = vmatpush1.bf16.msra.mxu0 %v2117_v61  ;;  %982 = vmatpush1.bf16.msra.mxu1 %v2120_v62 }
  0x96   : > { %942 = vmatprep.subr.bf16.mxu0 %v2125_v63  ;;  %983 = vmatprep.subr.bf16.mxu1 %v2128_v1 }
  0x99   : > { %943 = vmatpush1.bf16.msra.mxu0 %v2123_v2  ;;  %984 = vmatpush1.bf16.msra.mxu1 %v2126_v3 }
  0x9a   : > { %1010 = vmatprep.subr.bf16.mxu0 %v2131_v4  ;;  %1051 = vmatprep.subr.bf16.mxu1 %v2134_v5 }
  0x9c   : > { %961 = vmatmul.mubr.bf16.vlgmr.msra.gmra.mrb[4].mxu0 %v2584_v36  ;;  %1002 = vmatmul.mubr.bf16.vlgmr.msra.gmra.mrb[4].mxu1 %v2584_v36 }
  0x9d   : > { %1011 = vmatpush1.bf16.msra.mxu0 %v2129_v6  ;;  %1052 = vmatpush1.bf16.msra.mxu1 %v2132_v7 }
  0x9e   : > { %1012 = vmatprep.subr.bf16.mxu0 %v2137_v8  ;;  %1053 = vmatprep.subr.bf16.mxu1 %v2140_v9 }
  0x9f   : > { %1042 = vmatprep.mubr.bf16.mxu0 %v2387_v0  ;;  %1083 = vmatprep.mubr.bf16.mxu1 %v2387_v0 }
  0xa1   : > { %1013 = vmatpush1.bf16.msra.mxu0 %v2135_v10  ;;  %1054 = vmatpush1.bf16.msra.mxu1 %v2138_v11 }
  0xa2   : > { %1014 = vmatprep.subr.bf16.mxu0 %v2143_v12  ;;  %1055 = vmatprep.subr.bf16.mxu1 %v2146_v13 }
  0xa5   : > { %1015 = vmatpush1.bf16.msra.mxu0 %v2141_v14  ;;  %1056 = vmatpush1.bf16.msra.mxu1 %v2144_v15 }
  0xa6   : > { %1016 = vmatprep.subr.bf16.mxu0 %v2149_v16  ;;  %1057 = vmatprep.subr.bf16.mxu1 %v2152_v17 }
  0xa9   : > { %1017 = vmatpush1.bf16.msra.mxu0 %v2147_v18  ;;  %1058 = vmatpush1.bf16.msra.mxu1 %v2150_v19 }
  0xaa   : > { %1018 = vmatprep.subr.bf16.mxu0 %v2155_v20  ;;  %1059 = vmatprep.subr.bf16.mxu1 %v2158_v21 }
  0xad   : > { %1019 = vmatpush1.bf16.msra.mxu0 %v2153_v22  ;;  %1060 = vmatpush1.bf16.msra.mxu1 %v2156_v23 }
  0xae   : > { %1020 = vmatprep.subr.bf16.mxu0 %v2161_v24  ;;  %1061 = vmatprep.subr.bf16.mxu1 %v2164_v25 }
  0xb1   : > { %1021 = vmatpush1.bf16.msra.mxu0 %v2159_v26  ;;  %1062 = vmatpush1.bf16.msra.mxu1 %v2162_v27 }
  0xb2   : > { %1022 = vmatprep.subr.bf16.mxu0 %v2167_v28  ;;  %1063 = vmatprep.subr.bf16.mxu1 %v2170_v29 }
  0xb5   : > { %1023 = vmatpush1.bf16.msra.mxu0 %v2165_v30  ;;  %1064 = vmatpush1.bf16.msra.mxu1 %v2168_v31 }
  0xb6   : > { %1024 = vmatprep.subr.bf16.mxu0 %v2173_v32  ;;  %1065 = vmatprep.subr.bf16.mxu1 %v2176_v33 }
  0xb9   : > { %1025 = vmatpush1.bf16.msra.mxu0 %v2171_v34  ;;  %1066 = vmatpush1.bf16.msra.mxu1 %v2174_v35 }
  0xbc   : > { %1043 = vmatmul.mubr.bf16.vlgmr.msra.gmra.mrb[8].mxu0 %v2584_v36  ;;  %1084 = vmatmul.mubr.bf16.vlgmr.msra.gmra.mrb[8].mxu1 %v2584_v36 }
 0x14f   : > { %v880_v46 = vpop.f32.mrb[0].mxu0  ;;  %v921_v47 = vpop.f32.mrb[0].mxu1 }
 0x150   : > { %v1092_v48 = vpack.c.bf16 %v880_v46, %v880_v46  ;;  %v1100_v49 = vpack.c.bf16 %v921_v47, %v921_v47  ;;  %v882_v50 = vpop.f32.mrb[1].mxu0  ;;  %v923_v51 = vpop.f32.mrb[1].mxu1 }
 0x151   : > { %v1126_v52 = vpack.c.bf16 %v882_v50, %v882_v50  ;;  %v1134_v53 = vpack.c.bf16 %v923_v51, %v923_v51  ;;  %v884_v54 = vpop.f32.mrb[2].mxu0  ;;  %v925_v36 = vpop.f32.mrb[2].mxu1 }
 0x152   : > { %v1099_v55 = vrot.slane %v1092_v48, %v2596_v44  ;;  %v1107_v56 = vrot.slane %v1100_v49, %v2596_v44  ;;  %v885_v58 = vpop.f32.mrb[3].mxu0  ;;  %v926_v59 = vpop.f32.mrb[3].mxu1 }
 0x153   : > { %v1133_v60 = vrot.slane %v1126_v52, %v2596_v44  ;;  %v1141_v61 = vrot.slane %v1134_v53, %v2596_v44 }
 0x154   : > { %v1108_v62 = vcombine.low %v1099_v55, %v1107_v56  ;;  %v1109_v63 = vcombine.high %v1099_v55, %v1107_v56 }
 0x155   : > { %v1142_v1 = vcombine.low %v1133_v60, %v1141_v61  ;;  %v1143_v2 = vcombine.high %v1133_v60, %v1141_v61 }
 0x156   : > { %v1116_v3 = vrot.slane %v1108_v62, %v2600_v57  ;;  %v1123_v4 = vrot.slane %v1109_v63, %v2600_v57 }
 0x157   : > { %v1150_v5 = vrot.slane %v1142_v1, %v2600_v57  ;;  %v1157_v6 = vrot.slane %v1143_v2, %v2600_v57 }
 0x158   : > { %v1124_v7 = vcombine.high %v1116_v3, %v2387_v0  ;;  %v1125_v8 = vcombine.high %v1123_v4, %v2387_v0  ;;  %v1164_v9 = vshrl.u32 %v1116_v3, 16  ;;  %v1180_v10 = vshrl.u32 %v1123_v4, 16 }
 0x159   : > { %v1158_v11 = vcombine.high %v1150_v5, %v2387_v0  ;;  %v1159_v12 = vcombine.high %v1157_v6, %v2387_v0  ;;  %v1162_v13 = vpack.i.b16 %v1150_v5, %v1116_v3  ;;  %v1165_v14 = vshrl.u32 %v1150_v5, 16 }
 0x15a   : > { %v1172_v15 = vshrl.u32 %v1124_v7, 16  ;;  %v1188_v16 = vshrl.u32 %v1125_v8, 16  ;;  %v1178_v17 = vpack.i.b16 %v1157_v6, %v1123_v4  ;;  %v1181_v18 = vshrl.u32 %v1157_v6, 16 }
 0x15b   : > { %v1166_v19 = vpack.i.b16 %v1165_v14, %v1164_v9  ;;  %v1170_v20 = vpack.i.b16 %v1158_v11, %v1124_v7  ;;  %v1173_v21 = vshrl.u32 %v1158_v11, 16  ;;  %v1186_v22 = vpack.i.b16 %v1159_v12, %v1125_v8 }
 0x15c   : > { %v1182_v23 = vpack.i.b16 %v1181_v18, %v1180_v10  ;;  %v1189_v24 = vshrl.u32 %v1159_v12, 16  ;;  %v1192_v25 = vcombine.low %v1162_v13, %v1178_v17 }
 0x15d   : > { %v1174_v26 = vpack.i.b16 %v1173_v21, %v1172_v15  ;;  %v1200_v27 = vcombine.low %v1170_v20, %v1186_v22 }
 0x15e   : > { %v1190_v28 = vpack.i.b16 %v1189_v24, %v1188_v16  ;;  %v1217_v29 = vcombine.low %v1166_v19, %v1182_v23  ;;  %v1199_v30 = vrot.slane %v1192_v25, %v2596_v44 }
 0x15f   : > { %v1207_v31 = vrot.slane %v1200_v27, %v2596_v44 }
 0x160   : > { %v1225_v32 = vcombine.low %v1174_v26, %v1190_v28  ;;  %v1224_v34 = vrot.slane %v1217_v29, %v2596_v44 }
 0x161   : > { %v1208_v33 = vcombine.low %v1199_v30, %v1207_v31 }
 0x162   : > { %v1232_v35 = vrot.slane %v1225_v32, %v2596_v44 }
 0x163   : > { %v1215_v37 = vrot.slane %v1208_v33, %v2600_v57 }
 0x164   : > { %v1233_v38 = vcombine.low %v1224_v34, %v1232_v35 }
 0x165   : > { %v1216_v39 = vcombine.high %v1215_v37, %v2387_v0  ;;  %v1246_v43 = vshrl.u32 %v1215_v37, 16 }
 0x166   : > { %v1240_v40 = vrot.slane %v1233_v38, %v2600_v57 }
 0x167   : > { %v1254_v48 = vshrl.u32 %v1216_v39, 16 }
 0x168   : > { %v1241_v41 = vcombine.high %v1240_v40, %v2387_v0  ;;  %v1244_v42 = vpack.i.b16 %v1240_v40, %v1215_v37  ;;  %v1247_v45 = vshrl.u32 %v1240_v40, 16 }
 0x16a   : > { %v1248_v46 = vpack.i.b16 %v1247_v45, %v1246_v43  ;;  %v1252_v47 = vpack.i.b16 %v1241_v41, %v1216_v39  ;;  %v1255_v49 = vshrl.u32 %v1241_v41, 16  ;;  %1258 = vst [vmem:[%s252_s12] sm:$0xf] %v1244_v42 }
 0x16c   : > { %v1256_v50 = vpack.i.b16 %v1255_v49, %v1254_v48  ;;  %1259 = vst [vmem:[%s252_s12 + $0x4] sm:$0xf] %v1248_v46  ;;  %1260 = vst [vmem:[%s252_s12 + $0x8] sm:$0xf] %v1252_v47 }
 0x16e   : > { %1261 = vst [vmem:[%s252_s12 + $0xc] sm:$0xf] %v1256_v50 }
 0x16f   : > { %v962_v51 = vpop.f32.mrb[4].mxu0  ;;  %v1003_v52 = vpop.f32.mrb[4].mxu1 }
 0x170   : > { %2248 = shalt.err (!%p2245_p9)
}
 0x171   : > { %s2249_s5 = scalar_lea.hbm %s2631_s27, 256  ;;  %s2253_s26 = scalar_lea.hbm %s2800_s2, 512 }
 0x172   : > { %p2250_p1 = scmp.ne.s32.totalorder %s2631_s27, %s2249_s5  ;;  %p2254_p3 = scmp.lt.u32.totalorder %s2631_s27, %s2800_s2 }
 0x173   : > { %p2255_p13 = scmp.lt.u32.totalorder %s2253_s26, %s2249_s5  ;;  %p2257_p6 = scmp.lt.u32.totalorder %s2249_s5, %s2631_s27 }
 0x174   : > { %p2251_p2 = pnand %p2250_p1, %p2514_p10 }
 0x175   : > { %p2256_p4 = por %p2255_p13, %p2254_p3 }
 0x176   : > { %p2252_p7 = pneg %p2251_p2 }
 0x177   : > { %p2258_p8 = por %p2257_p6, %p2256_p4 }
 0x179   : > { %p2259_p12 = pnand %p2258_p8, %p2252_p7 }
 0x17b   : > { %2262 = shalt.err (!%p2259_p12)
}
 0x17c   : > { %s2391_s13 = smov 64   ;;  %s2392_s9 = smov 4   ;;  %v1262_v53 = vpack.c.bf16 %v962_v51, %v962_v51  ;;  %v1270_v54 = vpack.c.bf16 %v1003_v52, %v1003_v52  ;;  %v964_v36 = vpop.f32.mrb[5].mxu0  ;;  %v1005_v55 = vpop.f32.mrb[5].mxu1 }
 0x17d   : > { %1949 = dma.vmem_to_hbm [thread:$0]  (%p2514_p10), %s2633_s14, 256, %s2631_s27, %s1603_s18, %s2391_s13, %s2391_s13, %s2392_s9   ;;  %v1296_v56 = vpack.c.bf16 %v964_v36, %v964_v36  ;;  %v1304_v58 = vpack.c.bf16 %v1005_v55, %v1005_v55  ;;  %v966_v59 = vpop.f32.mrb[6].mxu0  ;;  %v1007_v60 = vpop.f32.mrb[6].mxu1 }
 0x17e   : > { %v1269_v61 = vrot.slane %v1262_v53, %v2596_v44  ;;  %v1277_v62 = vrot.slane %v1270_v54, %v2596_v44  ;;  %v967_v63 = vpop.f32.mrb[7].mxu0  ;;  %v1008_v1 = vpop.f32.mrb[7].mxu1  ;;  %s1607_s28 = sand.u32 1, %s2451_s21   ;;  %s259_s14 = scalar_lea.vmem [#allocation8], %s2618_s23 }
 0x17f   : > { %v1303_v2 = vrot.slane %v1296_v56, %v2596_v44  ;;  %v1311_v3 = vrot.slane %v1304_v58, %v2596_v44  ;;  %s1644_s27 = sshll.u32 %s259_s14, 4  ;;  %s2688_s5 = scalar_lea.hbm %s2801_s3, %s2624_s25  ;;  %s2690_s27 = int_to_ptr.vmem [resolvable:$true] %s1644_s27 }
 0x180   : > { %v1278_v4 = vcombine.low %v1269_v61, %v1277_v62  ;;  %v1279_v5 = vcombine.high %v1269_v61, %v1277_v62  ;;  %s2692_s21 = scalar_lea.sflag [#allocation9], %s1607_s28  ;;  %s2263_s11 = scalar_lea.vmem %s2690_s27, 256 }
 0x181   : > { %v1312_v6 = vcombine.low %v1303_v2, %v1311_v3  ;;  %v1313_v7 = vcombine.high %v1303_v2, %v1311_v3  ;;  %p2264_p11 = scmp.ne.s32.totalorder %s2690_s27, %s2263_s11  ;;  %s2393_s12 = smov [#allocation8]  }
 0x182   : > { %v1286_v8 = vrot.slane %v1278_v4, %v2600_v57  ;;  %v1293_v9 = vrot.slane %v1279_v5, %v2600_v57  ;;  %s2267_s26 = sshll.u32 %s2393_s12, 4  ;;  %s2268_s26 = int_to_ptr.vmem [resolvable:$false] %s2267_s26 }
 0x183   : > { %v1320_v10 = vrot.slane %v1312_v6, %v2600_v57  ;;  %v1327_v11 = vrot.slane %v1313_v7, %v2600_v57  ;;  %p2265_p0 = pnand %p2264_p11, %p2514_p10  ;;  %s2269_s30 = scalar_lea.vmem %s2268_s26, 512 }
 0x184   : > { %v1294_v12 = vcombine.high %v1286_v8, %v2387_v0  ;;  %v1295_v13 = vcombine.high %v1293_v9, %v2387_v0  ;;  %v1334_v14 = vshrl.u32 %v1286_v8, 16  ;;  %v1350_v15 = vshrl.u32 %v1293_v9, 16  ;;  %p2270_p9 = scmp.lt.s32.totalorder %s2690_s27, %s2268_s26  ;;  %p2271_p1 = scmp.lt.s32.totalorder %s2269_s30, %s2263_s11 }
 0x185   : > { %v1328_v16 = vcombine.high %v1320_v10, %v2387_v0  ;;  %v1329_v17 = vcombine.high %v1327_v11, %v2387_v0  ;;  %v1332_v18 = vpack.i.b16 %v1320_v10, %v1286_v8  ;;  %v1335_v19 = vshrl.u32 %v1320_v10, 16  ;;  %p2266_p5 = pneg %p2265_p0 }
 0x186   : > { %v1342_v20 = vshrl.u32 %v1294_v12, 16  ;;  %v1358_v21 = vshrl.u32 %v1295_v13, 16  ;;  %v1348_v22 = vpack.i.b16 %v1327_v11, %v1293_v9  ;;  %v1351_v23 = vshrl.u32 %v1327_v11, 16  ;;  %p2272_p2 = por %p2271_p1, %p2270_p9 }
 0x187   : > { %v1336_v24 = vpack.i.b16 %v1335_v19, %v1334_v14  ;;  %v1340_v25 = vpack.i.b16 %v1328_v16, %v1294_v12  ;;  %v1343_v26 = vshrl.u32 %v1328_v16, 16  ;;  %v1356_v27 = vpack.i.b16 %v1329_v17, %v1295_v13 }
 0x188   : > { %v1352_v28 = vpack.i.b16 %v1351_v23, %v1350_v15  ;;  %v1359_v29 = vshrl.u32 %v1329_v17, 16  ;;  %v1362_v30 = vcombine.low %v1332_v18, %v1348_v22  ;;  %p2273_p7 = pnand %p2272_p2, %p2266_p5 }
 0x189   : > { %v1344_v31 = vpack.i.b16 %v1343_v26, %v1342_v20  ;;  %v1370_v32 = vcombine.low %v1340_v25, %v1356_v27 }
 0x18a   : > { %v1360_v33 = vpack.i.b16 %v1359_v29, %v1358_v21  ;;  %v1387_v34 = vcombine.low %v1336_v24, %v1352_v28  ;;  %v1369_v35 = vrot.slane %v1362_v30, %v2596_v44 }
 0x18b   : > { %v1377_v37 = vrot.slane %v1370_v32, %v2596_v44 }
 0x18c   : > { %v1395_v38 = vcombine.low %v1344_v31, %v1360_v33  ;;  %v1394_v40 = vrot.slane %v1387_v34, %v2596_v44 }
 0x18d   : > { %v1378_v39 = vcombine.low %v1369_v35, %v1377_v37 }
 0x18e   : > { %v1402_v41 = vrot.slane %v1395_v38, %v2596_v44 }
 0x18f   : > { %v1385_v42 = vrot.slane %v1378_v39, %v2600_v57  ;;  %v1044_v55 = vpop.f32.mrb[8].mxu0  ;;  %v1085_v56 = vpop.f32.mrb[8].mxu1 }
 0x190   : > { %v1403_v43 = vcombine.low %v1394_v40, %v1402_v41 }
 0x191   : > { %v1386_v45 = vcombine.high %v1385_v42, %v2387_v0  ;;  %v1416_v49 = vshrl.u32 %v1385_v42, 16 }
 0x192   : > { %v1410_v46 = vrot.slane %v1403_v43, %v2600_v57 }
 0x193   : > { %v1424_v53 = vshrl.u32 %v1386_v45, 16 }
 0x194   : > { %v1411_v47 = vcombine.high %v1410_v46, %v2387_v0  ;;  %v1414_v48 = vpack.i.b16 %v1410_v46, %v1385_v42  ;;  %v1417_v50 = vshrl.u32 %v1410_v46, 16 }
 0x196   : > { %v1418_v51 = vpack.i.b16 %v1417_v50, %v1416_v49  ;;  %v1422_v52 = vpack.i.b16 %v1411_v47, %v1386_v45  ;;  %v1425_v54 = vshrl.u32 %v1411_v47, 16  ;;  %1428 = vst [vmem:[%s259_s14] sm:$0xf] %v1414_v48 }
 0x198   : > { %v1426_v36 = vpack.i.b16 %v1425_v54, %v1424_v53  ;;  %1429 = vst [vmem:[%s259_s14 + $0x4] sm:$0xf] %v1418_v51  ;;  %1430 = vst [vmem:[%s259_s14 + $0x8] sm:$0xf] %v1422_v52 }
 0x19a   : > { %1431 = vst [vmem:[%s259_s14 + $0xc] sm:$0xf] %v1426_v36 }
 0x19b   : > { %2276 = shalt.err (!%p2273_p7)
}
 0x19c   : > { %s2277_s7 = scalar_lea.hbm %s2688_s5, 256  ;;  %s2281_s18 = scalar_lea.hbm %s2801_s3, 512 }
 0x19d   : > { %p2278_p3 = scmp.ne.s32.totalorder %s2688_s5, %s2277_s7  ;;  %p2282_p6 = scmp.lt.u32.totalorder %s2688_s5, %s2801_s3 }
 0x19e   : > { %p2283_p8 = scmp.lt.u32.totalorder %s2281_s18, %s2277_s7  ;;  %p2285_p11 = scmp.lt.u32.totalorder %s2277_s7, %s2688_s5 }
 0x19f   : > { %p2279_p13 = pnand %p2278_p3, %p2514_p10 }
 0x1a0   : > { %p2284_p12 = por %p2283_p8, %p2282_p6 }
 0x1a1   : > { %p2280_p4 = pneg %p2279_p13 }
 0x1a2   : > { %p2286_p0 = por %p2285_p11, %p2284_p12 }
 0x1a4   : > { %p2287_p5 = pnand %p2286_p0, %p2280_p4 }
 0x1a6   : > { %2290 = shalt.err (!%p2287_p5)
}
 0x1a7   : > { %1950 = dma.vmem_to_hbm [thread:$0]  (%p2514_p10), %s2690_s27, 256, %s2688_s5, %s2692_s21, %s2391_s13, %s2391_s13, %s2392_s9   ;;  %v1432_v58 = vpack.c.bf16 %v1044_v55, %v1044_v55  ;;  %v1440_v59 = vpack.c.bf16 %v1085_v56, %v1085_v56  ;;  %v1046_v60 = vpop.f32.mrb[9].mxu0  ;;  %v1087_v61 = vpop.f32.mrb[9].mxu1 }
 0x1a8   : > { %v1466_v62 = vpack.c.bf16 %v1046_v60, %v1046_v60  ;;  %v1474_v63 = vpack.c.bf16 %v1087_v61, %v1087_v61  ;;  %v1048_v1 = vpop.f32.mrb[10].mxu0  ;;  %v1089_v2 = vpop.f32.mrb[10].mxu1  ;;  %s266_s27 = scalar_lea.vmem [#allocation10], %s2618_s23  ;;  %s2744_s30 = scalar_lea.hbm %s2802_s4, %s2624_s25 }
 0x1a9   : > { %v1439_v3 = vrot.slane %v1432_v58, %v2596_v44  ;;  %v1447_v4 = vrot.slane %v1440_v59, %v2596_v44  ;;  %v1049_v5 = vpop.f32.mrb[11].mxu0  ;;  %v1090_v6 = vpop.f32.mrb[11].mxu1  ;;  %s1661_s5 = sshll.u32 %s266_s27, 4  ;;  %s2394_s7 = smov [#allocation10]   ;;  %s2746_s5 = int_to_ptr.vmem [resolvable:$true] %s1661_s5 }
 0x1aa   : > { %v1473_v7 = vrot.slane %v1466_v62, %v2596_v44  ;;  %v1481_v8 = vrot.slane %v1474_v63, %v2596_v44  ;;  %s2291_s23 = scalar_lea.vmem %s2746_s5, 256  ;;  %s2295_s28 = sshll.u32 %s2394_s7, 4  ;;  %s2296_s28 = int_to_ptr.vmem [resolvable:$false] %s2295_s28 }
 0x1ab   : > { %v1448_v9 = vcombine.low %v1439_v3, %v1447_v4  ;;  %v1449_v10 = vcombine.high %v1439_v3, %v1447_v4  ;;  %p2292_p9 = scmp.ne.s32.totalorder %s2746_s5, %s2291_s23  ;;  %s2297_s14 = scalar_lea.vmem %s2296_s28, 512 }
 0x1ac   : > { %v1482_v11 = vcombine.low %v1473_v7, %v1481_v8  ;;  %v1483_v12 = vcombine.high %v1473_v7, %v1481_v8  ;;  %p2298_p7 = scmp.lt.s32.totalorder %s2746_s5, %s2296_s28  ;;  %p2299_p3 = scmp.lt.s32.totalorder %s2297_s14, %s2291_s23 }
 0x1ad   : > { %v1456_v13 = vrot.slane %v1448_v9, %v2600_v57  ;;  %v1463_v14 = vrot.slane %v1449_v10, %v2600_v57  ;;  %p2293_p1 = pnand %p2292_p9, %p2514_p10 }
 0x1ae   : > { %v1490_v15 = vrot.slane %v1482_v11, %v2600_v57  ;;  %v1497_v16 = vrot.slane %v1483_v12, %v2600_v57  ;;  %p2300_p13 = por %p2299_p3, %p2298_p7 }
 0x1af   : > { %v1464_v17 = vcombine.high %v1456_v13, %v2387_v0  ;;  %v1465_v18 = vcombine.high %v1463_v14, %v2387_v0  ;;  %v1504_v19 = vshrl.u32 %v1456_v13, 16  ;;  %v1520_v20 = vshrl.u32 %v1463_v14, 16  ;;  %p2294_p2 = pneg %p2293_p1 }
 0x1b0   : > { %v1498_v21 = vcombine.high %v1490_v15, %v2387_v0  ;;  %v1499_v22 = vcombine.high %v1497_v16, %v2387_v0  ;;  %v1502_v23 = vpack.i.b16 %v1490_v15, %v1456_v13  ;;  %v1505_v24 = vshrl.u32 %v1490_v15, 16 }
 0x1b1   : > { %v1512_v25 = vshrl.u32 %v1464_v17, 16  ;;  %v1528_v26 = vshrl.u32 %v1465_v18, 16  ;;  %v1518_v27 = vpack.i.b16 %v1497_v16, %v1463_v14  ;;  %v1521_v28 = vshrl.u32 %v1497_v16, 16  ;;  %p2301_p4 = pnand %p2300_p13, %p2294_p2 }
 0x1b2   : > { %v1506_v29 = vpack.i.b16 %v1505_v24, %v1504_v19  ;;  %v1510_v30 = vpack.i.b16 %v1498_v21, %v1464_v17  ;;  %v1513_v31 = vshrl.u32 %v1498_v21, 16  ;;  %v1526_v32 = vpack.i.b16 %v1499_v22, %v1465_v18 }
 0x1b3   : > { %v1522_v33 = vpack.i.b16 %v1521_v28, %v1520_v20  ;;  %v1529_v34 = vshrl.u32 %v1499_v22, 16  ;;  %v1532_v35 = vcombine.low %v1502_v23, %v1518_v27 }
 0x1b4   : > { %v1514_v37 = vpack.i.b16 %v1513_v31, %v1512_v25  ;;  %v1540_v38 = vcombine.low %v1510_v30, %v1526_v32 }
 0x1b5   : > { %v1530_v39 = vpack.i.b16 %v1529_v34, %v1528_v26  ;;  %v1557_v40 = vcombine.low %v1506_v29, %v1522_v33  ;;  %v1539_v41 = vrot.slane %v1532_v35, %v2596_v44 }
 0x1b6   : > { %v1547_v42 = vrot.slane %v1540_v38, %v2596_v44 }
 0x1b7   : > { %v1565_v43 = vcombine.low %v1514_v37, %v1530_v39  ;;  %v1564_v46 = vrot.slane %v1557_v40, %v2596_v44 }
 0x1b8   : > { %v1548_v45 = vcombine.low %v1539_v41, %v1547_v42 }
 0x1b9   : > { %v1572_v47 = vrot.slane %v1565_v43, %v2596_v44 }
 0x1ba   : > { %v1555_v48 = vrot.slane %v1548_v45, %v2600_v57 }
 0x1bb   : > { %v1573_v49 = vcombine.low %v1564_v46, %v1572_v47 }
 0x1bc   : > { %v1556_v50 = vcombine.high %v1555_v48, %v2387_v0  ;;  %v1586_v54 = vshrl.u32 %v1555_v48, 16 }
 0x1bd   : > { %v1580_v51 = vrot.slane %v1573_v49, %v2600_v57 }
 0x1be   : > { %v1594_v58 = vshrl.u32 %v1556_v50, 16 }
 0x1bf   : > { %v1581_v52 = vcombine.high %v1580_v51, %v2387_v0  ;;  %v1584_v53 = vpack.i.b16 %v1580_v51, %v1555_v48  ;;  %v1587_v36 = vshrl.u32 %v1580_v51, 16 }
 0x1c1   : > { %v1588_v55 = vpack.i.b16 %v1587_v36, %v1586_v54  ;;  %v1592_v56 = vpack.i.b16 %v1581_v52, %v1556_v50  ;;  %v1595_v44 = vshrl.u32 %v1581_v52, 16  ;;  %1598 = vst [vmem:[%s266_s27] sm:$0xf] %v1584_v53 }
 0x1c3   : > { %v1596_v59 = vpack.i.b16 %v1595_v44, %v1594_v58  ;;  %1599 = vst [vmem:[%s266_s27 + $0x4] sm:$0xf] %v1588_v55  ;;  %1600 = vst [vmem:[%s266_s27 + $0x8] sm:$0xf] %v1592_v56 }
 0x1c5   : > { %1601 = vst [vmem:[%s266_s27 + $0xc] sm:$0xf] %v1596_v59 }
 0x1c6   : > { %2304 = shalt.err (!%p2301_p4)
}
 0x1c7   : > { %s2305_s25 = scalar_lea.hbm %s2744_s30, 256  ;;  %s2309_s12 = scalar_lea.hbm %s2802_s4, 512 }
 0x1c8   : > { %p2306_p6 = scmp.ne.s32.totalorder %s2744_s30, %s2305_s25  ;;  %p2310_p11 = scmp.lt.u32.totalorder %s2744_s30, %s2802_s4 }
 0x1c9   : > { %p2311_p0 = scmp.lt.u32.totalorder %s2309_s12, %s2305_s25  ;;  %p2313_p9 = scmp.lt.u32.totalorder %s2305_s25, %s2744_s30 }
 0x1ca   : > { %p2307_p8 = pnand %p2306_p6, %p2514_p10 }
 0x1cb   : > { %p2312_p5 = por %p2311_p0, %p2310_p11 }
 0x1cc   : > { %p2308_p12 = pneg %p2307_p8 }
 0x1cd   : > { %p2314_p1 = por %p2313_p9, %p2312_p5 }
 0x1cf   : > { %p2315_p2 = pnand %p2314_p1, %p2308_p12 }
 0x1d1   : > { %2318 = shalt.err (!%p2315_p2)
}
 0x1d2   : > { %1951 = dma.vmem_to_hbm [thread:$0]  (%p2514_p10), %s2746_s5, 256, %s2744_s30, %s2692_s21, %s2391_s13, %s2391_s13, %s2392_s9  }
 0x1d3 PF: > { %s1676_s26 = sand.u32 1, %s2361_s15   ;;  %p2818_p7 = scmp.ne.s32.totalorder %s2807_s24, 0 }
 0x1d4   : > { %p2819_p3 = scmp.ge.s32.totalorder %s2381_s20, 2  ;;  %s1677_s23 = scalar_lea.sflag [#allocation4], %s1676_s26 }
 0x1d6   : > { %p1964_p13 = pnand %p2819_p3, %p2818_p7 }
 0x1d8   : > { %2352 = dma.done.wait (!%p1964_p13), %s1677_s23, 256  }
 0x1d9   : > { %2354 = vsyncadd (!%p1964_p13), %s1677_s23, 4294967040  ;;  %s1685_s6 = sand.u32 1, %s1821_s22  }
 0x1da   : > { %s1686_s7 = scalar_lea.sflag [#allocation9], %s1685_s6 }
 0x1db   : > { %2356 = dma.done.wait (!%p1964_p13), %s1686_s7, 512  }
 0x1dc   : > { %2358 = vsyncadd (!%p1964_p13), %s1686_s7, 4294966784  ;;  %s25_s20 = sadd.s32 1, %s2381_s20   ;;  %s2820_s15 = smov %s2365_s16 }
 0x1dd   : > { %p22_p10 = scmp.ge.s32.totalorder %s25_s20, 4   ;;  %s2821_s16 = smov %s2369_s17 }
 0x1de   : > { %s2822_s17 = smov %s2523_s8  ;;  %s2823_s18 = smov %s2377_s19 }
 0x1df   : > { %s2824_s19 = smov %s2826_s29  ;;  %24 = sbr.rel (!%p22_p10) target bundleno = 9 (0x9), region = 109 }
 0x1e6   :  { %1700 = vsyncpa [#allocation3], 1 }
 0x1e7   :  { %1702 = vsyncpa [#allocation3 + $0x1], 1 }
 0x1e8   :  { %1703 = vsyncpa [#allocation6], 1 }
 0x1e9   :  { %1704 = vsyncpa [#allocation4], 1 }
 0x1ea   :  { %1706 = vsyncpa [#allocation4 + $0x1], 1 }
 0x1eb   :  { %1707 = vsyncpa [#allocation9], 1 }
 0x1ec   :  { %1709 = vsyncpa [#allocation9 + $0x1], 1 }

// kernel: tpu_custom_call.1
= control target key start
LH: loop header
LB: loop body
LE: loop exit
PB: predicated region body
PF: predicated region fallthrough
CT: control target
= control target key end

     0   :  { %10 = vsyncpa [#allocation3], 0  ;;  %s2798_s0 = inlined_call_operand.hbm [shape: f32[2,8,128], index: 0, kind: input, shape index: {}]   ;;  %s2799_s1 = inlined_call_operand.hbm [shape: bf16[128,1536], index: 1, kind: input, shape index: {}]   ;;  %s2800_s2 = inlined_call_operand.hbm [shape: bf16[2,4,8,128], index: 2, kind: output, shape index: {0}]   ;;  %s2801_s3 = inlined_call_operand.hbm [shape: bf16[2,4,8,128], index: 3, kind: output, shape index: {1}]   ;;  %s2802_s4 = inlined_call_operand.hbm [shape: bf16[2,4,8,128], index: 4, kind: output, shape index: {2}]  }
   0x1   :  { %12 = vsyncpa [#allocation3 + $0x1], 0 }
   0x2   :  { %13 = vsyncpa [#allocation6], 0 }
   0x3   :  { %14 = vsyncpa [#allocation4], 0 }
   0x4   :  { %16 = vsyncpa [#allocation4 + $0x1], 0 }
   0x5   :  { %17 = vsyncpa [#allocation9], 0 }
   0x6   :  { %19 = vsyncpa [#allocation9 + $0x1], 0  ;;  %s2420_s15 = smov 0   ;;  %s2422_s16 = smov 0  }
   0x7   :  { %s2424_s17 = smov 0   ;;  %s2426_s18 = smov 0  }
   0x8   :  { %s2428_s19 = smov 0   ;;  %s2430_s20 = smov 0  }
   0x9 LB: > { %s2451_s21 = sadd.s32 4294967295, %s2381_s20   ;;  %s1821_s22 = sadd.s32 4294967294, %s2381_s20   ;;  %s2381_s20 = sphi %s2430_s20, %s25_s20   ;;  %s2377_s19 = sphi %s2428_s19, %s2824_s19   ;;  %s2373_s18 = sphi %s2426_s18, %s2823_s18   ;;  %s2369_s17 = sphi %s2424_s17, %s2822_s17   ;;  %s2365_s16 = sphi %s2422_s16, %s2821_s16   ;;  %s2361_s15 = sphi %s2420_s15, %s2820_s15  }
   0xa   : > { %p59_p0 = scmp.ne.s32.totalorder %s2365_s16, %s2361_s15  ;;  %p2803_p1 = scmp.eq.s32.totalorder %s2451_s21, 0 }
   0xb   : > { %p112_p3 = scmp.eq.s32.totalorder %s1821_s22, 1  ;;  %p1822_p5 = scmp.ge.s32.totalorder %s2381_s20, 1 }
   0xc   : > { %p2462_p4 = por %p2803_p1, %p59_p0  ;;  %p175_p7 = scmp.lt.s32.totalorder %s2381_s20, 3 }
   0xd   : > { %p2467_p6 = por %p112_p3, %p59_p0  ;;  %s2383_s26 = smov [#allocation5]  }
   0xe   : > { %s2806_s23 = scalar_select %p2462_p4, 1, 0 }
   0xf   : > { %s2807_s24 = scalar_select %p2467_p6, 1, 0 }
  0x10   : > { %p2472_p8 = pnand %p1822_p5, %p175_p7  ;;  %s187_s27 = sshll.u32 %s2383_s26, 4  ;;  %s188_s27 = int_to_ptr.vmem [resolvable:$true] %s187_s27 }
  0x11   : > { %s37_s29 = sadd.s32 1, %s2377_s19  ;;  %s2177_s6 = scalar_lea.hbm %s2799_s1, 12288 }
  0x12   : > { %s2808_s25 = scalar_select %p2472_p8, 1, 0 }
  0x13   : > { %p1955_p9 = pneg %p2472_p8  ;;  %p2178_p12 = scmp.ne.s32.totalorder %s2799_s1, %s2177_s6 }
  0x14   : > { %p2184_p5 = scmp.lt.u32.totalorder %s2177_s6, %s2799_s1 }
  0x15   : > { %p2481_p11 = pnand %p1955_p9, %p2803_p1 }
  0x17   : > { %p2179_p13 = pneg %p2481_p11 }
  0x19   : > { %p2180_p0 = pnand %p2179_p13, %p2178_p12 }
  0x1b   : > { %p2181_p3 = pneg %p2180_p0 }
  0x1d   : > { %p2186_p7 = pnand %p2184_p5, %p2181_p3 }
  0x1f   : > { %2189 = shalt.err (!%p2186_p7)
}
  0x20   : > { %s2190_s11 = scalar_lea.vmem %s188_s27, 12288  ;;  %p2198_p2 = scmp.lt.s32.totalorder %s188_s27, %s188_s27 }
  0x21   : > { %p2191_p9 = scmp.ne.s32.totalorder %s188_s27, %s2190_s11  ;;  %p2199_p6 = scmp.lt.s32.totalorder %s2190_s11, %s2190_s11 }
  0x23   : > { %p2193_p10 = pnand %p2191_p9, %p2179_p13  ;;  %p2200_p4 = por %p2199_p6, %p2198_p2 }
  0x25   : > { %p2194_p1 = pneg %p2193_p10 }
  0x27   : > { %p2201_p8 = pnand %p2200_p4, %p2194_p1 }
  0x29   : > { %2204 = shalt.err (!%p2201_p8)
}
  0x2a   : > { %s2384_s12 = smov 768   ;;  %s2385_s13 = smov 48  }
  0x2b   : > { %1958 = dma.hbm_to_vmem [thread:$0]  (!%p2481_p11), %s2799_s1, 12288, %s188_s27, [#allocation6], %s2384_s12, %s2384_s12, %s2385_s13  }
  0x2c   : > { %p39_p1 = scmp.ge.s32.totalorder %s37_s29, 2  ;;  %s46_s30 = sadd.s32 1, %s2369_s17 }
  0x2d   : > { %p53_p2 = scmp.ne.s32.totalorder %s2369_s17, %s2365_s16  ;;  %p54_p4 = scmp.eq.s32.totalorder %s2381_s20, 0 }
  0x2e   : > { %s2826_s29 = smov (%p39_p1, %s37_s29), 0  ;;  %p2811_p8 = scmp.eq.s32.totalorder %s2451_s21, 1 }
  0x2f   : > { %p2508_p6 = por %p54_p4, %p53_p2  ;;  %s41_s28 = ssub.s32 %s2377_s19, %s2826_s29 }
  0x30   : > { %p2514_p10 = por %p2811_p8, %p53_p2  ;;  %p1974_p12 = scmp.lt.s32.totalorder %s2381_s20, 2 }
  0x31   : > { %p44_p11 = scmp.eq.s32.totalorder %s41_s28, 0  ;;  %s201_s27 = sand.u32 1, %s2369_s17  }
  0x32   : > { %s1825_s7 = sshll.u32 %s201_s27, 3  ;;  %s1826_s9 = sshll.u32 %s2377_s19, 7 }
  0x33   : > { %s2523_s8 = scalar_select %p44_p11, %s2369_s17, %s46_s30  }
  0x34   : > { %s2529_s12 = scalar_lea.hbm %s2798_s0, %s1826_s9  ;;  %s205_s13 = scalar_lea.vmem [#allocation2], %s1825_s7 }
  0x35   : > { %s213_s14 = sshll.u32 %s205_s13, 4  ;;  %p2535_p13 = pnand %p1974_p12, %p2508_p6  ;;  %s2531_s14 = int_to_ptr.vmem [resolvable:$true] %s213_s14 }
  0x36   : > { %s202_s30 = scalar_lea.sflag [#allocation3], %s201_s27  ;;  %s2205_s28 = scalar_lea.hbm %s2529_s12, 128 }
  0x37   : > { %p2206_p0 = scmp.ne.s32.totalorder %s2529_s12, %s2205_s28  ;;  %p2207_p3 = pneg %p2535_p13 }
  0x38   : > { %s2210_s10 = scalar_lea.hbm %s2798_s0, 256  ;;  %p2211_p9 = scmp.lt.u32.totalorder %s2529_s12, %s2798_s0 }
  0x39   : > { %p2208_p5 = pnand %p2207_p3, %p2206_p0  ;;  %p2212_p1 = scmp.lt.u32.totalorder %s2210_s10, %s2205_s28 }
  0x3a   : > { %p2214_p4 = scmp.lt.u32.totalorder %s2205_s28, %s2529_s12 }
  0x3b   : > { %p2209_p7 = pneg %p2208_p5  ;;  %p2213_p2 = por %p2212_p1, %p2211_p9 }
  0x3d   : > { %p2215_p6 = por %p2214_p4, %p2213_p2 }
  0x3f   : > { %p2216_p8 = pnand %p2215_p6, %p2209_p7 }
  0x41   : > { %2219 = shalt.err (!%p2216_p8)
}
  0x42   : > { %s2220_s27 = scalar_lea.vmem %s2531_s14, 128  ;;  %s2386_s13 = smov [#allocation2]  }
  0x43   : > { %p2221_p12 = scmp.ne.s32.totalorder %s2531_s14, %s2220_s27  ;;  %s2225_s7 = sshll.u32 %s2386_s13, 4  ;;  %s2226_s7 = int_to_ptr.vmem [resolvable:$false] %s2225_s7 }
  0x44   : > { %s2227_s9 = scalar_lea.vmem %s2226_s7, 256  ;;  %p2228_p5 = scmp.lt.s32.totalorder %s2531_s14, %s2226_s7 }
  0x45   : > { %p2223_p11 = pnand %p2221_p12, %p2207_p3  ;;  %p2229_p9 = scmp.lt.s32.totalorder %s2227_s9, %s2220_s27 }
  0x47   : > { %p2224_p0 = pneg %p2223_p11  ;;  %p2230_p1 = por %p2229_p9, %p2228_p5 }
  0x49   : > { %p2231_p2 = pnand %p2230_p1, %p2224_p0 }
  0x4b   : > { %2234 = shalt.err (!%p2231_p2)
}
  0x4c   : > { %1962 = dma.hbm_to_vmem [thread:$0]  (!%p2535_p13), %s2529_s12, 128, %s2531_s14, %s202_s30  }
  0x4d   : > { %p2814_p7 = scmp.ne.s32.totalorder %s2808_s25, 0 }
  0x4e   : > { %s2567_s28 = sand.u32 (!%p2814_p7), 1, %s2365_s16   ;;  %p2815_p3 = scmp.ne.s32.totalorder (!%p2814_p7), %s2806_s23, 0 }
  0x4f   : > { %222 = sbr.rel (%p2814_p7) target bundleno = 467 (0x1d3), region = 28  ;;  %s1828_s10 = sshll.u32 (!%p2814_p7), %s2567_s28, 3 }
  0x50   : > { %s225_s5 = scalar_lea.sflag (!%p2814_p7), [#allocation3], %s2567_s28  ;;  %s2571_s11 = scalar_lea.vmem (!%p2814_p7), [#allocation2], %s1828_s10 }
  0x56   : > { %2344 = dma.done.wait (%p2815_p3), %s225_s5, 128  }
  0x57   : > { %2346 = vsyncadd (%p2815_p3), %s225_s5, 4294967168  ;;  %p2816_p13 = scmp.eq.s32.totalorder %s2451_s21, 0 }
  0x59   : > { %2348 = dma.done.wait (%p2816_p13), [#allocation6], 12288   ;;  %p2817_p4 = pmov %p2816_p13 }
  0x5a   : > { %v2387_v0 = vmov 0   ;;  %v2033_v1 = vld [vmem:[#allocation5 + $0x4] ss:$48 sps:$4 sm:$0xff]   ;;  %v2035_v2 = vld [vmem:[#allocation5 + $0xc] ss:$48 sps:$4 sm:$0xff]   ;;  %s2618_s23 = sshll.u32 %s2567_s28, 4 }
  0x5b   : > { %2350 = vsyncadd (%p2817_p4), [#allocation6], 4294955008  ;;  %878 = vmatprep.mubr.bf16.mxu0 %v2387_v0  ;;  %919 = vmatprep.mubr.bf16.mxu1 %v2387_v0  ;;  %v2037_v3 = vld [vmem:[#allocation5] ss:$48 sps:$4 sm:$0xff]   ;;  %v2038_v4 = vld [vmem:[#allocation5 + $0x8] ss:$48 sps:$4 sm:$0xff]  }
  0x5c   : > { %846 = vmatprep.subr.bf16.mxu0 %v2033_v1  ;;  %887 = vmatprep.subr.bf16.mxu1 %v2035_v2  ;;  %v2039_v5 = vld [vmem:[#allocation5 + $0x64] ss:$48 sps:$4 sm:$0xff]   ;;  %v2041_v6 = vld [vmem:[#allocation5 + $0x6c] ss:$48 sps:$4 sm:$0xff]   ;;  %v2043_v7 = vld [vmem:[#allocation5 + $0x60] ss:$48 sps:$4 sm:$0xff]  }
  0x5d   : > { %847 = vmatpush1.bf16.msra.mxu0 %v2037_v3  ;;  %888 = vmatpush1.bf16.msra.mxu1 %v2038_v4  ;;  %v2044_v8 = vld [vmem:[#allocation5 + $0x68] ss:$48 sps:$4 sm:$0xff]   ;;  %v2045_v9 = vld [vmem:[#allocation5 + $0xc4] ss:$48 sps:$4 sm:$0xff]   ;;  %v2047_v10 = vld [vmem:[#allocation5 + $0xcc] ss:$48 sps:$4 sm:$0xff]  }
  0x5e   : > { %848 = vmatprep.subr.bf16.mxu0 %v2039_v5  ;;  %889 = vmatprep.subr.bf16.mxu1 %v2041_v6  ;;  %v2049_v11 = vld [vmem:[#allocation5 + $0xc0] ss:$48 sps:$4 sm:$0xff]   ;;  %v2050_v12 = vld [vmem:[#allocation5 + $0xc8] ss:$48 sps:$4 sm:$0xff]   ;;  %v2051_v13 = vld [vmem:[#allocation5 + $0x124] ss:$48 sps:$4 sm:$0xff]  }
  0x5f   : > { %v2053_v14 = vld [vmem:[#allocation5 + $0x12c] ss:$48 sps:$4 sm:$0xff]   ;;  %v2055_v15 = vld [vmem:[#allocation5 + $0x120] ss:$48 sps:$4 sm:$0xff]   ;;  %v2056_v16 = vld [vmem:[#allocation5 + $0x128] ss:$48 sps:$4 sm:$0xff]  }
  0x60   : > { %v2057_v17 = vld [vmem:[#allocation5 + $0x184] ss:$48 sps:$4 sm:$0xff]   ;;  %v2059_v18 = vld [vmem:[#allocation5 + $0x18c] ss:$48 sps:$4 sm:$0xff]   ;;  %v2061_v19 = vld [vmem:[#allocation5 + $0x180] ss:$48 sps:$4 sm:$0xff]  }
  0x61   : > { %849 = vmatpush1.bf16.msra.mxu0 %v2043_v7  ;;  %890 = vmatpush1.bf16.msra.mxu1 %v2044_v8  ;;  %v2062_v20 = vld [vmem:[#allocation5 + $0x188] ss:$48 sps:$4 sm:$0xff]   ;;  %v2063_v21 = vld [vmem:[#allocation5 + $0x1e4] ss:$48 sps:$4 sm:$0xff]   ;;  %v2065_v22 = vld [vmem:[#allocation5 + $0x1ec] ss:$48 sps:$4 sm:$0xff]  }
  0x62   : > { %850 = vmatprep.subr.bf16.mxu0 %v2045_v9  ;;  %891 = vmatprep.subr.bf16.mxu1 %v2047_v10  ;;  %v2067_v23 = vld [vmem:[#allocation5 + $0x1e0] ss:$48 sps:$4 sm:$0xff]   ;;  %v2068_v24 = vld [vmem:[#allocation5 + $0x1e8] ss:$48 sps:$4 sm:$0xff]   ;;  %v2069_v25 = vld [vmem:[#allocation5 + $0x244] ss:$48 sps:$4 sm:$0xff]  }
  0x63   : > { %v2071_v26 = vld [vmem:[#allocation5 + $0x24c] ss:$48 sps:$4 sm:$0xff]   ;;  %v2073_v27 = vld [vmem:[#allocation5 + $0x240] ss:$48 sps:$4 sm:$0xff]   ;;  %v2074_v28 = vld [vmem:[#allocation5 + $0x248] ss:$48 sps:$4 sm:$0xff]  }
  0x64   : > { %v2075_v29 = vld [vmem:[#allocation5 + $0x2a4] ss:$48 sps:$4 sm:$0xff]   ;;  %v2077_v30 = vld [vmem:[#allocation5 + $0x2ac] ss:$48 sps:$4 sm:$0xff]   ;;  %v2079_v31 = vld [vmem:[#allocation5 + $0x2a0] ss:$48 sps:$4 sm:$0xff]  }
  0x65   : > { %851 = vmatpush1.bf16.msra.mxu0 %v2049_v11  ;;  %892 = vmatpush1.bf16.msra.mxu1 %v2050_v12  ;;  %v2080_v32 = vld [vmem:[#allocation5 + $0x2a8] ss:$48 sps:$4 sm:$0xff]   ;;  %v2083_v34 = vld [vmem:[#allocation5 + $0x14] ss:$48 sps:$4 sm:$0xff]   ;;  %v2086_v35 = vld [vmem:[#allocation5 + $0x1c] ss:$48 sps:$4 sm:$0xff]  }
  0x66   : > { %852 = vmatprep.subr.bf16.mxu0 %v2051_v13  ;;  %893 = vmatprep.subr.bf16.mxu1 %v2053_v14  ;;  %v268_v33 = vld [vmem:[%s2571_s11] sm:$0xff]  ;;  %s2624_s25 = sshll.u32 %s2373_s18, 8  ;;  %s252_s12 = scalar_lea.vmem [#allocation7], %s2618_s23 }
  0x67   : > { %v2584_v36 = vpack.c.bf16 %v268_v33, %v268_v33  ;;  %v2081_v37 = vld [vmem:[#allocation5 + $0x10] ss:$48 sps:$4 sm:$0xff]   ;;  %v2084_v38 = vld [vmem:[#allocation5 + $0x18] ss:$48 sps:$4 sm:$0xff]   ;;  %v2089_v39 = vld [vmem:[#allocation5 + $0x74] ss:$48 sps:$4 sm:$0xff]   ;;  %s2631_s27 = scalar_lea.hbm %s2800_s2, %s2624_s25 }
  0x68   : > { %v2092_v40 = vld [vmem:[#allocation5 + $0x7c] ss:$48 sps:$4 sm:$0xff]   ;;  %v2087_v41 = vld [vmem:[#allocation5 + $0x70] ss:$48 sps:$4 sm:$0xff]   ;;  %v2090_v42 = vld [vmem:[#allocation5 + $0x78] ss:$48 sps:$4 sm:$0xff]  }
  0x69   : > { %853 = vmatpush1.bf16.msra.mxu0 %v2055_v15  ;;  %894 = vmatpush1.bf16.msra.mxu1 %v2056_v16  ;;  %v2095_v43 = vld [vmem:[#allocation5 + $0xd4] ss:$48 sps:$4 sm:$0xff]   ;;  %v2098_v44 = vld [vmem:[#allocation5 + $0xdc] ss:$48 sps:$4 sm:$0xff]   ;;  %v2093_v45 = vld [vmem:[#allocation5 + $0xd0] ss:$48 sps:$4 sm:$0xff]  }
  0x6a   : > { %854 = vmatprep.subr.bf16.mxu0 %v2057_v17  ;;  %895 = vmatprep.subr.bf16.mxu1 %v2059_v18  ;;  %v2096_v46 = vld [vmem:[#allocation5 + $0xd8] ss:$48 sps:$4 sm:$0xff]   ;;  %v2101_v47 = vld [vmem:[#allocation5 + $0x134] ss:$48 sps:$4 sm:$0xff]   ;;  %v2104_v48 = vld [vmem:[#allocation5 + $0x13c] ss:$48 sps:$4 sm:$0xff]  }
  0x6b   : > { %v2099_v49 = vld [vmem:[#allocation5 + $0x130] ss:$48 sps:$4 sm:$0xff]   ;;  %v2102_v50 = vld [vmem:[#allocation5 + $0x138] ss:$48 sps:$4 sm:$0xff]   ;;  %v2107_v51 = vld [vmem:[#allocation5 + $0x194] ss:$48 sps:$4 sm:$0xff]  }
  0x6c   : > { %v2110_v52 = vld [vmem:[#allocation5 + $0x19c] ss:$48 sps:$4 sm:$0xff]   ;;  %v2105_v53 = vld [vmem:[#allocation5 + $0x190] ss:$48 sps:$4 sm:$0xff]   ;;  %v2108_v54 = vld [vmem:[#allocation5 + $0x198] ss:$48 sps:$4 sm:$0xff]  }
  0x6d   : > { %855 = vmatpush1.bf16.msra.mxu0 %v2061_v19  ;;  %896 = vmatpush1.bf16.msra.mxu1 %v2062_v20  ;;  %v2113_v55 = vld [vmem:[#allocation5 + $0x1f4] ss:$48 sps:$4 sm:$0xff]   ;;  %v2116_v56 = vld [vmem:[#allocation5 + $0x1fc] ss:$48 sps:$4 sm:$0xff]   ;;  %v2111_v57 = vld [vmem:[#allocation5 + $0x1f0] ss:$48 sps:$4 sm:$0xff]  }
  0x6e   : > { %856 = vmatprep.subr.bf16.mxu0 %v2063_v21  ;;  %897 = vmatprep.subr.bf16.mxu1 %v2065_v22  ;;  %v2114_v58 = vld [vmem:[#allocation5 + $0x1f8] ss:$48 sps:$4 sm:$0xff]   ;;  %v2119_v59 = vld [vmem:[#allocation5 + $0x254] ss:$48 sps:$4 sm:$0xff]   ;;  %v2122_v60 = vld [vmem:[#allocation5 + $0x25c] ss:$48 sps:$4 sm:$0xff]  }
  0x6f   : > { %v2117_v61 = vld [vmem:[#allocation5 + $0x250] ss:$48 sps:$4 sm:$0xff]   ;;  %v2120_v62 = vld [vmem:[#allocation5 + $0x258] ss:$48 sps:$4 sm:$0xff]   ;;  %v2125_v63 = vld [vmem:[#allocation5 + $0x2b4] ss:$48 sps:$4 sm:$0xff]  }
  0x70   : > { %v2128_v1 = vld [vmem:[#allocation5 + $0x2bc] ss:$48 sps:$4 sm:$0xff]   ;;  %v2123_v2 = vld [vmem:[#allocation5 + $0x2b0] ss:$48 sps:$4 sm:$0xff]   ;;  %v2126_v3 = vld [vmem:[#allocation5 + $0x2b8] ss:$48 sps:$4 sm:$0xff]  }
  0x71   : > { %857 = vmatpush1.bf16.msra.mxu0 %v2067_v23  ;;  %898 = vmatpush1.bf16.msra.mxu1 %v2068_v24  ;;  %v2131_v4 = vld [vmem:[#allocation5 + $0x24] ss:$48 sps:$4 sm:$0xff]   ;;  %v2134_v5 = vld [vmem:[#allocation5 + $0x2c] ss:$48 sps:$4 sm:$0xff]   ;;  %v2129_v6 = vld [vmem:[#allocation5 + $0x20] ss:$48 sps:$4 sm:$0xff]  }
  0x72   : > { %858 = vmatprep.subr.bf16.mxu0 %v2069_v25  ;;  %899 = vmatprep.subr.bf16.mxu1 %v2071_v26  ;;  %v2132_v7 = vld [vmem:[#allocation5 + $0x28] ss:$48 sps:$4 sm:$0xff]   ;;  %v2137_v8 = vld [vmem:[#allocation5 + $0x84] ss:$48 sps:$4 sm:$0xff]   ;;  %v2140_v9 = vld [vmem:[#allocation5 + $0x8c] ss:$48 sps:$4 sm:$0xff]  }
  0x73   : > { %v2135_v10 = vld [vmem:[#allocation5 + $0x80] ss:$48 sps:$4 sm:$0xff]   ;;  %v2138_v11 = vld [vmem:[#allocation5 + $0x88] ss:$48 sps:$4 sm:$0xff]   ;;  %v2143_v12 = vld [vmem:[#allocation5 + $0xe4] ss:$48 sps:$4 sm:$0xff]  }
  0x74   : > { %v2146_v13 = vld [vmem:[#allocation5 + $0xec] ss:$48 sps:$4 sm:$0xff]   ;;  %v2141_v14 = vld [vmem:[#allocation5 + $0xe0] ss:$48 sps:$4 sm:$0xff]   ;;  %v2144_v15 = vld [vmem:[#allocation5 + $0xe8] ss:$48 sps:$4 sm:$0xff]  }
  0x75   : > { %859 = vmatpush1.bf16.msra.mxu0 %v2073_v27  ;;  %900 = vmatpush1.bf16.msra.mxu1 %v2074_v28  ;;  %v2149_v16 = vld [vmem:[#allocation5 + $0x144] ss:$48 sps:$4 sm:$0xff]   ;;  %v2152_v17 = vld [vmem:[#allocation5 + $0x14c] ss:$48 sps:$4 sm:$0xff]   ;;  %v2147_v18 = vld [vmem:[#allocation5 + $0x140] ss:$48 sps:$4 sm:$0xff]  }
  0x76   : > { %860 = vmatprep.subr.bf16.mxu0 %v2075_v29  ;;  %901 = vmatprep.subr.bf16.mxu1 %v2077_v30  ;;  %v2150_v19 = vld [vmem:[#allocation5 + $0x148] ss:$48 sps:$4 sm:$0xff]   ;;  %v2155_v20 = vld [vmem:[#allocation5 + $0x1a4] ss:$48 sps:$4 sm:$0xff]   ;;  %v2158_v21 = vld [vmem:[#allocation5 + $0x1ac] ss:$48 sps:$4 sm:$0xff]  }
  0x77   : > { %v2153_v22 = vld [vmem:[#allocation5 + $0x1a0] ss:$48 sps:$4 sm:$0xff]   ;;  %v2156_v23 = vld [vmem:[#allocation5 + $0x1a8] ss:$48 sps:$4 sm:$0xff]   ;;  %v2161_v24 = vld [vmem:[#allocation5 + $0x204] ss:$48 sps:$4 sm:$0xff]  }
  0x78   : > { %v2164_v25 = vld [vmem:[#allocation5 + $0x20c] ss:$48 sps:$4 sm:$0xff]   ;;  %v2159_v26 = vld [vmem:[#allocation5 + $0x200] ss:$48 sps:$4 sm:$0xff]   ;;  %v2162_v27 = vld [vmem:[#allocation5 + $0x208] ss:$48 sps:$4 sm:$0xff]  }
  0x79   : > { %861 = vmatpush1.bf16.msra.mxu0 %v2079_v31  ;;  %902 = vmatpush1.bf16.msra.mxu1 %v2080_v32  ;;  %v2167_v28 = vld [vmem:[#allocation5 + $0x264] ss:$48 sps:$4 sm:$0xff]   ;;  %v2170_v29 = vld [vmem:[#allocation5 + $0x26c] ss:$48 sps:$4 sm:$0xff]   ;;  %v2165_v30 = vld [vmem:[#allocation5 + $0x260] ss:$48 sps:$4 sm:$0xff]  }
  0x7a   : > { %928 = vmatprep.subr.bf16.mxu0 %v2083_v34  ;;  %969 = vmatprep.subr.bf16.mxu1 %v2086_v35  ;;  %v2168_v31 = vld [vmem:[#allocation5 + $0x268] ss:$48 sps:$4 sm:$0xff]   ;;  %v2173_v32 = vld [vmem:[#allocation5 + $0x2c4] ss:$48 sps:$4 sm:$0xff]   ;;  %v2176_v33 = vld [vmem:[#allocation5 + $0x2cc] ss:$48 sps:$4 sm:$0xff]  }
  0x7b   : > { %v2171_v34 = vld [vmem:[#allocation5 + $0x2c0] ss:$48 sps:$4 sm:$0xff]   ;;  %v2174_v35 = vld [vmem:[#allocation5 + $0x2c8] ss:$48 sps:$4 sm:$0xff]   ;;  %s1627_s14 = sshll.u32 %s252_s12, 4  ;;  %s1603_s18 = scalar_lea.sflag [#allocation4], %s2567_s28  ;;  %s2633_s14 = int_to_ptr.vmem [resolvable:$true] %s1627_s14 }
  0x7c   : > { %879 = vmatmul.mubr.bf16.vlgmr.msra.gmra.mrb[0].mxu0 %v2584_v36  ;;  %920 = vmatmul.mubr.bf16.vlgmr.msra.gmra.mrb[0].mxu1 %v2584_v36  ;;  %s2235_s13 = scalar_lea.vmem %s2633_s14, 256  ;;  %s2390_s7 = smov [#allocation7]  }
  0x7d   : > { %929 = vmatpush1.bf16.msra.mxu0 %v2081_v37  ;;  %970 = vmatpush1.bf16.msra.mxu1 %v2084_v38  ;;  %v2388_v37 = vmov 1983009808   ;;  %p2236_p6 = scmp.ne.s32.totalorder %s2633_s14, %s2235_s13  ;;  %s2239_s9 = sshll.u32 %s2390_s7, 4  ;;  %s2240_s9 = int_to_ptr.vmem [resolvable:$false] %s2239_s9 }
  0x7e   : > { %930 = vmatprep.subr.bf16.mxu0 %v2089_v39  ;;  %971 = vmatprep.subr.bf16.mxu1 %v2092_v40  ;;  %v1094_v38 = vunpack.c.l.s4 %v2388_v37  ;;  %v1096_v39 = vlaneseq  ;;  %s2241_s10 = scalar_lea.vmem %s2240_s9, 512  ;;  %p2242_p11 = scmp.lt.s32.totalorder %s2633_s14, %s2240_s9 }
  0x7f   : > { %960 = vmatprep.mubr.bf16.mxu0 %v2387_v0  ;;  %1001 = vmatprep.mubr.bf16.mxu1 %v2387_v0  ;;  %p2237_p8 = pnand %p2236_p6, %p2514_p10  ;;  %p2243_p0 = scmp.lt.s32.totalorder %s2241_s10, %s2235_s13 }
  0x80   : > { %v1095_v40 = vunpack.c.0.s8 %v1094_v38 }
  0x81   : > { %931 = vmatpush1.bf16.msra.mxu0 %v2087_v41  ;;  %972 = vmatpush1.bf16.msra.mxu1 %v2090_v42  ;;  %v1097_v41 = vshrl.u32 %v1096_v39, 7  ;;  %v2389_v42 = vmov 1934713408   ;;  %p2238_p12 = pneg %p2237_p8  ;;  %p2244_p5 = por %p2243_p0, %p2242_p11 }
  0x82   : > { %932 = vmatprep.subr.bf16.mxu0 %v2095_v43  ;;  %973 = vmatprep.subr.bf16.mxu1 %v2098_v44  ;;  %v1111_v43 = vunpack.c.l.s4 %v2389_v42 }
  0x83   : > { %v2596_v44 = vsub.s32 %v1095_v40, %v1097_v41  ;;  %p2245_p9 = pnand %p2244_p5, %p2238_p12 }
  0x85   : > { %933 = vmatpush1.bf16.msra.mxu0 %v2093_v45  ;;  %974 = vmatpush1.bf16.msra.mxu1 %v2096_v46  ;;  %v1112_v45 = vunpack.c.0.s8 %v1111_v43 }
  0x86   : > { %934 = vmatprep.subr.bf16.mxu0 %v2101_v47  ;;  %975 = vmatprep.subr.bf16.mxu1 %v2104_v48 }
  0x89   : > { %935 = vmatpush1.bf16.msra.mxu0 %v2099_v49  ;;  %976 = vmatpush1.bf16.msra.mxu1 %v2102_v50 }
  0x8a   : > { %936 = vmatprep.subr.bf16.mxu0 %v2107_v51  ;;  %977 = vmatprep.subr.bf16.mxu1 %v2110_v52 }
  0x8d   : > { %937 = vmatpush1.bf16.msra.mxu0 %v2105_v53  ;;  %978 = vmatpush1.bf16.msra.mxu1 %v2108_v54 }
  0x8e   : > { %938 = vmatprep.subr.bf16.mxu0 %v2113_v55  ;;  %979 = vmatprep.subr.bf16.mxu1 %v2116_v56 }
  0x91   : > { %939 = vmatpush1.bf16.msra.mxu0 %v2111_v57  ;;  %980 = vmatpush1.bf16.msra.mxu1 %v2114_v58  ;;  %v2600_v57 = vsub.s32 %v1112_v45, %v1097_v41 }
  0x92   : > { %940 = vmatprep.subr.bf16.mxu0 %v2119_v59  ;;  %981 = vmatprep.subr.bf16.mxu1 %v2122_v60 }
  0x95   : > { %941 = vmatpush1.bf16.msra.mxu0 %v2117_v61  ;;  %982 = vmatpush1.bf16.msra.mxu1 %v2120_v62 }
  0x96   : > { %942 = vmatprep.subr.bf16.mxu0 %v2125_v63  ;;  %983 = vmatprep.subr.bf16.mxu1 %v2128_v1 }
  0x99   : > { %943 = vmatpush1.bf16.msra.mxu0 %v2123_v2  ;;  %984 = vmatpush1.bf16.msra.mxu1 %v2126_v3 }
  0x9a   : > { %1010 = vmatprep.subr.bf16.mxu0 %v2131_v4  ;;  %1051 = vmatprep.subr.bf16.mxu1 %v2134_v5 }
  0x9c   : > { %961 = vmatmul.mubr.bf16.vlgmr.msra.gmra.mrb[4].mxu0 %v2584_v36  ;;  %1002 = vmatmul.mubr.bf16.vlgmr.msra.gmra.mrb[4].mxu1 %v2584_v36 }
  0x9d   : > { %1011 = vmatpush1.bf16.msra.mxu0 %v2129_v6  ;;  %1052 = vmatpush1.bf16.msra.mxu1 %v2132_v7 }
  0x9e   : > { %1012 = vmatprep.subr.bf16.mxu0 %v2137_v8  ;;  %1053 = vmatprep.subr.bf16.mxu1 %v2140_v9 }
  0x9f   : > { %1042 = vmatprep.mubr.bf16.mxu0 %v2387_v0  ;;  %1083 = vmatprep.mubr.bf16.mxu1 %v2387_v0 }
  0xa1   : > { %1013 = vmatpush1.bf16.msra.mxu0 %v2135_v10  ;;  %1054 = vmatpush1.bf16.msra.mxu1 %v2138_v11 }
  0xa2   : > { %1014 = vmatprep.subr.bf16.mxu0 %v2143_v12  ;;  %1055 = vmatprep.subr.bf16.mxu1 %v2146_v13 }
  0xa5   : > { %1015 = vmatpush1.bf16.msra.mxu0 %v2141_v14  ;;  %1056 = vmatpush1.bf16.msra.mxu1 %v2144_v15 }
  0xa6   : > { %1016 = vmatprep.subr.bf16.mxu0 %v2149_v16  ;;  %1057 = vmatprep.subr.bf16.mxu1 %v2152_v17 }
  0xa9   : > { %1017 = vmatpush1.bf16.msra.mxu0 %v2147_v18  ;;  %1058 = vmatpush1.bf16.msra.mxu1 %v2150_v19 }
  0xaa   : > { %1018 = vmatprep.subr.bf16.mxu0 %v2155_v20  ;;  %1059 = vmatprep.subr.bf16.mxu1 %v2158_v21 }
  0xad   : > { %1019 = vmatpush1.bf16.msra.mxu0 %v2153_v22  ;;  %1060 = vmatpush1.bf16.msra.mxu1 %v2156_v23 }
  0xae   : > { %1020 = vmatprep.subr.bf16.mxu0 %v2161_v24  ;;  %1061 = vmatprep.subr.bf16.mxu1 %v2164_v25 }
  0xb1   : > { %1021 = vmatpush1.bf16.msra.mxu0 %v2159_v26  ;;  %1062 = vmatpush1.bf16.msra.mxu1 %v2162_v27 }
  0xb2   : > { %1022 = vmatprep.subr.bf16.mxu0 %v2167_v28  ;;  %1063 = vmatprep.subr.bf16.mxu1 %v2170_v29 }
  0xb5   : > { %1023 = vmatpush1.bf16.msra.mxu0 %v2165_v30  ;;  %1064 = vmatpush1.bf16.msra.mxu1 %v2168_v31 }
  0xb6   : > { %1024 = vmatprep.subr.bf16.mxu0 %v2173_v32  ;;  %1065 = vmatprep.subr.bf16.mxu1 %v2176_v33 }
  0xb9   : > { %1025 = vmatpush1.bf16.msra.mxu0 %v2171_v34  ;;  %1066 = vmatpush1.bf16.msra.mxu1 %v2174_v35 }
  0xbc   : > { %1043 = vmatmul.mubr.bf16.vlgmr.msra.gmra.mrb[8].mxu0 %v2584_v36  ;;  %1084 = vmatmul.mubr.bf16.vlgmr.msra.gmra.mrb[8].mxu1 %v2584_v36 }
 0x14f   : > { %v880_v46 = vpop.f32.mrb[0].mxu0  ;;  %v921_v47 = vpop.f32.mrb[0].mxu1 }
 0x150   : > { %v1092_v48 = vpack.c.bf16 %v880_v46, %v880_v46  ;;  %v1100_v49 = vpack.c.bf16 %v921_v47, %v921_v47  ;;  %v882_v50 = vpop.f32.mrb[1].mxu0  ;;  %v923_v51 = vpop.f32.mrb[1].mxu1 }
 0x151   : > { %v1126_v52 = vpack.c.bf16 %v882_v50, %v882_v50  ;;  %v1134_v53 = vpack.c.bf16 %v923_v51, %v923_v51  ;;  %v884_v54 = vpop.f32.mrb[2].mxu0  ;;  %v925_v36 = vpop.f32.mrb[2].mxu1 }
 0x152   : > { %v1099_v55 = vrot.slane %v1092_v48, %v2596_v44  ;;  %v1107_v56 = vrot.slane %v1100_v49, %v2596_v44  ;;  %v885_v58 = vpop.f32.mrb[3].mxu0  ;;  %v926_v59 = vpop.f32.mrb[3].mxu1 }
 0x153   : > { %v1133_v60 = vrot.slane %v1126_v52, %v2596_v44  ;;  %v1141_v61 = vrot.slane %v1134_v53, %v2596_v44 }
 0x154   : > { %v1108_v62 = vcombine.low %v1099_v55, %v1107_v56  ;;  %v1109_v63 = vcombine.high %v1099_v55, %v1107_v56 }
 0x155   : > { %v1142_v1 = vcombine.low %v1133_v60, %v1141_v61  ;;  %v1143_v2 = vcombine.high %v1133_v60, %v1141_v61 }
 0x156   : > { %v1116_v3 = vrot.slane %v1108_v62, %v2600_v57  ;;  %v1123_v4 = vrot.slane %v1109_v63, %v2600_v57 }
 0x157   : > { %v1150_v5 = vrot.slane %v1142_v1, %v2600_v57  ;;  %v1157_v6 = vrot.slane %v1143_v2, %v2600_v57 }
 0x158   : > { %v1124_v7 = vcombine.high %v1116_v3, %v2387_v0  ;;  %v1125_v8 = vcombine.high %v1123_v4, %v2387_v0  ;;  %v1164_v9 = vshrl.u32 %v1116_v3, 16  ;;  %v1180_v10 = vshrl.u32 %v1123_v4, 16 }
 0x159   : > { %v1158_v11 = vcombine.high %v1150_v5, %v2387_v0  ;;  %v1159_v12 = vcombine.high %v1157_v6, %v2387_v0  ;;  %v1162_v13 = vpack.i.b16 %v1150_v5, %v1116_v3  ;;  %v1165_v14 = vshrl.u32 %v1150_v5, 16 }
 0x15a   : > { %v1172_v15 = vshrl.u32 %v1124_v7, 16  ;;  %v1188_v16 = vshrl.u32 %v1125_v8, 16  ;;  %v1178_v17 = vpack.i.b16 %v1157_v6, %v1123_v4  ;;  %v1181_v18 = vshrl.u32 %v1157_v6, 16 }
 0x15b   : > { %v1166_v19 = vpack.i.b16 %v1165_v14, %v1164_v9  ;;  %v1170_v20 = vpack.i.b16 %v1158_v11, %v1124_v7  ;;  %v1173_v21 = vshrl.u32 %v1158_v11, 16  ;;  %v1186_v22 = vpack.i.b16 %v1159_v12, %v1125_v8 }
 0x15c   : > { %v1182_v23 = vpack.i.b16 %v1181_v18, %v1180_v10  ;;  %v1189_v24 = vshrl.u32 %v1159_v12, 16  ;;  %v1192_v25 = vcombine.low %v1162_v13, %v1178_v17 }
 0x15d   : > { %v1174_v26 = vpack.i.b16 %v1173_v21, %v1172_v15  ;;  %v1200_v27 = vcombine.low %v1170_v20, %v1186_v22 }
 0x15e   : > { %v1190_v28 = vpack.i.b16 %v1189_v24, %v1188_v16  ;;  %v1217_v29 = vcombine.low %v1166_v19, %v1182_v23  ;;  %v1199_v30 = vrot.slane %v1192_v25, %v2596_v44 }
 0x15f   : > { %v1207_v31 = vrot.slane %v1200_v27, %v2596_v44 }
 0x160   : > { %v1225_v32 = vcombine.low %v1174_v26, %v1190_v28  ;;  %v1224_v34 = vrot.slane %v1217_v29, %v2596_v44 }
 0x161   : > { %v1208_v33 = vcombine.low %v1199_v30, %v1207_v31 }
 0x162   : > { %v1232_v35 = vrot.slane %v1225_v32, %v2596_v44 }
 0x163   : > { %v1215_v37 = vrot.slane %v1208_v33, %v2600_v57 }
 0x164   : > { %v1233_v38 = vcombine.low %v1224_v34, %v1232_v35 }
 0x165   : > { %v1216_v39 = vcombine.high %v1215_v37, %v2387_v0  ;;  %v1246_v43 = vshrl.u32 %v1215_v37, 16 }
 0x166   : > { %v1240_v40 = vrot.slane %v1233_v38, %v2600_v57 }
 0x167   : > { %v1254_v48 = vshrl.u32 %v1216_v39, 16 }
 0x168   : > { %v1241_v41 = vcombine.high %v1240_v40, %v2387_v0  ;;  %v1244_v42 = vpack.i.b16 %v1240_v40, %v1215_v37  ;;  %v1247_v45 = vshrl.u32 %v1240_v40, 16 }
 0x16a   : > { %v1248_v46 = vpack.i.b16 %v1247_v45, %v1246_v43  ;;  %v1252_v47 = vpack.i.b16 %v1241_v41, %v1216_v39  ;;  %v1255_v49 = vshrl.u32 %v1241_v41, 16  ;;  %1258 = vst [vmem:[%s252_s12] sm:$0xf] %v1244_v42 }
 0x16c   : > { %v1256_v50 = vpack.i.b16 %v1255_v49, %v1254_v48  ;;  %1259 = vst [vmem:[%s252_s12 + $0x4] sm:$0xf] %v1248_v46  ;;  %1260 = vst [vmem:[%s252_s12 + $0x8] sm:$0xf] %v1252_v47 }
 0x16e   : > { %1261 = vst [vmem:[%s252_s12 + $0xc] sm:$0xf] %v1256_v50 }
 0x16f   : > { %v962_v51 = vpop.f32.mrb[4].mxu0  ;;  %v1003_v52 = vpop.f32.mrb[4].mxu1 }
 0x170   : > { %2248 = shalt.err (!%p2245_p9)
}
 0x171   : > { %s2249_s5 = scalar_lea.hbm %s2631_s27, 256  ;;  %s2253_s26 = scalar_lea.hbm %s2800_s2, 512 }
 0x172   : > { %p2250_p1 = scmp.ne.s32.totalorder %s2631_s27, %s2249_s5  ;;  %p2254_p3 = scmp.lt.u32.totalorder %s2631_s27, %s2800_s2 }
 0x173   : > { %p2255_p13 = scmp.lt.u32.totalorder %s2253_s26, %s2249_s5  ;;  %p2257_p6 = scmp.lt.u32.totalorder %s2249_s5, %s2631_s27 }
 0x174   : > { %p2251_p2 = pnand %p2250_p1, %p2514_p10 }
 0x175   : > { %p2256_p4 = por %p2255_p13, %p2254_p3 }
 0x176   : > { %p2252_p7 = pneg %p2251_p2 }
 0x177   : > { %p2258_p8 = por %p2257_p6, %p2256_p4 }
 0x179   : > { %p2259_p12 = pnand %p2258_p8, %p2252_p7 }
 0x17b   : > { %2262 = shalt.err (!%p2259_p12)
}
 0x17c   : > { %s2391_s13 = smov 64   ;;  %s2392_s9 = smov 4   ;;  %v1262_v53 = vpack.c.bf16 %v962_v51, %v962_v51  ;;  %v1270_v54 = vpack.c.bf16 %v1003_v52, %v1003_v52  ;;  %v964_v36 = vpop.f32.mrb[5].mxu0  ;;  %v1005_v55 = vpop.f32.mrb[5].mxu1 }
 0x17d   : > { %1949 = dma.vmem_to_hbm [thread:$0]  (%p2514_p10), %s2633_s14, 256, %s2631_s27, %s1603_s18, %s2391_s13, %s2391_s13, %s2392_s9   ;;  %v1296_v56 = vpack.c.bf16 %v964_v36, %v964_v36  ;;  %v1304_v58 = vpack.c.bf16 %v1005_v55, %v1005_v55  ;;  %v966_v59 = vpop.f32.mrb[6].mxu0  ;;  %v1007_v60 = vpop.f32.mrb[6].mxu1 }
 0x17e   : > { %v1269_v61 = vrot.slane %v1262_v53, %v2596_v44  ;;  %v1277_v62 = vrot.slane %v1270_v54, %v2596_v44  ;;  %v967_v63 = vpop.f32.mrb[7].mxu0  ;;  %v1008_v1 = vpop.f32.mrb[7].mxu1  ;;  %s1607_s28 = sand.u32 1, %s2451_s21   ;;  %s259_s14 = scalar_lea.vmem [#allocation8], %s2618_s23 }
 0x17f   : > { %v1303_v2 = vrot.slane %v1296_v56, %v2596_v44  ;;  %v1311_v3 = vrot.slane %v1304_v58, %v2596_v44  ;;  %s1644_s27 = sshll.u32 %s259_s14, 4  ;;  %s2688_s5 = scalar_lea.hbm %s2801_s3, %s2624_s25  ;;  %s2690_s27 = int_to_ptr.vmem [resolvable:$true] %s1644_s27 }
 0x180   : > { %v1278_v4 = vcombine.low %v1269_v61, %v1277_v62  ;;  %v1279_v5 = vcombine.high %v1269_v61, %v1277_v62  ;;  %s2692_s21 = scalar_lea.sflag [#allocation9], %s1607_s28  ;;  %s2263_s11 = scalar_lea.vmem %s2690_s27, 256 }
 0x181   : > { %v1312_v6 = vcombine.low %v1303_v2, %v1311_v3  ;;  %v1313_v7 = vcombine.high %v1303_v2, %v1311_v3  ;;  %p2264_p11 = scmp.ne.s32.totalorder %s2690_s27, %s2263_s11  ;;  %s2393_s12 = smov [#allocation8]  }
 0x182   : > { %v1286_v8 = vrot.slane %v1278_v4, %v2600_v57  ;;  %v1293_v9 = vrot.slane %v1279_v5, %v2600_v57  ;;  %s2267_s26 = sshll.u32 %s2393_s12, 4  ;;  %s2268_s26 = int_to_ptr.vmem [resolvable:$false] %s2267_s26 }
 0x183   : > { %v1320_v10 = vrot.slane %v1312_v6, %v2600_v57  ;;  %v1327_v11 = vrot.slane %v1313_v7, %v2600_v57  ;;  %p2265_p0 = pnand %p2264_p11, %p2514_p10  ;;  %s2269_s30 = scalar_lea.vmem %s2268_s26, 512 }
 0x184   : > { %v1294_v12 = vcombine.high %v1286_v8, %v2387_v0  ;;  %v1295_v13 = vcombine.high %v1293_v9, %v2387_v0  ;;  %v1334_v14 = vshrl.u32 %v1286_v8, 16  ;;  %v1350_v15 = vshrl.u32 %v1293_v9, 16  ;;  %p2270_p9 = scmp.lt.s32.totalorder %s2690_s27, %s2268_s26  ;;  %p2271_p1 = scmp.lt.s32.totalorder %s2269_s30, %s2263_s11 }
 0x185   : > { %v1328_v16 = vcombine.high %v1320_v10, %v2387_v0  ;;  %v1329_v17 = vcombine.high %v1327_v11, %v2387_v0  ;;  %v1332_v18 = vpack.i.b16 %v1320_v10, %v1286_v8  ;;  %v1335_v19 = vshrl.u32 %v1320_v10, 16  ;;  %p2266_p5 = pneg %p2265_p0 }
 0x186   : > { %v1342_v20 = vshrl.u32 %v1294_v12, 16  ;;  %v1358_v21 = vshrl.u32 %v1295_v13, 16  ;;  %v1348_v22 = vpack.i.b16 %v1327_v11, %v1293_v9  ;;  %v1351_v23 = vshrl.u32 %v1327_v11, 16  ;;  %p2272_p2 = por %p2271_p1, %p2270_p9 }
 0x187   : > { %v1336_v24 = vpack.i.b16 %v1335_v19, %v1334_v14  ;;  %v1340_v25 = vpack.i.b16 %v1328_v16, %v1294_v12  ;;  %v1343_v26 = vshrl.u32 %v1328_v16, 16  ;;  %v1356_v27 = vpack.i.b16 %v1329_v17, %v1295_v13 }
 0x188   : > { %v1352_v28 = vpack.i.b16 %v1351_v23, %v1350_v15  ;;  %v1359_v29 = vshrl.u32 %v1329_v17, 16  ;;  %v1362_v30 = vcombine.low %v1332_v18, %v1348_v22  ;;  %p2273_p7 = pnand %p2272_p2, %p2266_p5 }
 0x189   : > { %v1344_v31 = vpack.i.b16 %v1343_v26, %v1342_v20  ;;  %v1370_v32 = vcombine.low %v1340_v25, %v1356_v27 }
 0x18a   : > { %v1360_v33 = vpack.i.b16 %v1359_v29, %v1358_v21  ;;  %v1387_v34 = vcombine.low %v1336_v24, %v1352_v28  ;;  %v1369_v35 = vrot.slane %v1362_v30, %v2596_v44 }
 0x18b   : > { %v1377_v37 = vrot.slane %v1370_v32, %v2596_v44 }
 0x18c   : > { %v1395_v38 = vcombine.low %v1344_v31, %v1360_v33  ;;  %v1394_v40 = vrot.slane %v1387_v34, %v2596_v44 }
 0x18d   : > { %v1378_v39 = vcombine.low %v1369_v35, %v1377_v37 }
 0x18e   : > { %v1402_v41 = vrot.slane %v1395_v38, %v2596_v44 }
 0x18f   : > { %v1385_v42 = vrot.slane %v1378_v39, %v2600_v57  ;;  %v1044_v55 = vpop.f32.mrb[8].mxu0  ;;  %v1085_v56 = vpop.f32.mrb[8].mxu1 }
 0x190   : > { %v1403_v43 = vcombine.low %v1394_v40, %v1402_v41 }
 0x191   : > { %v1386_v45 = vcombine.high %v1385_v42, %v2387_v0  ;;  %v1416_v49 = vshrl.u32 %v1385_v42, 16 }
 0x192   : > { %v1410_v46 = vrot.slane %v1403_v43, %v2600_v57 }
 0x193   : > { %v1424_v53 = vshrl.u32 %v1386_v45, 16 }
 0x194   : > { %v1411_v47 = vcombine.high %v1410_v46, %v2387_v0  ;;  %v1414_v48 = vpack.i.b16 %v1410_v46, %v1385_v42  ;;  %v1417_v50 = vshrl.u32 %v1410_v46, 16 }
 0x196   : > { %v1418_v51 = vpack.i.b16 %v1417_v50, %v1416_v49  ;;  %v1422_v52 = vpack.i.b16 %v1411_v47, %v1386_v45  ;;  %v1425_v54 = vshrl.u32 %v1411_v47, 16  ;;  %1428 = vst [vmem:[%s259_s14] sm:$0xf] %v1414_v48 }
 0x198   : > { %v1426_v36 = vpack.i.b16 %v1425_v54, %v1424_v53  ;;  %1429 = vst [vmem:[%s259_s14 + $0x4] sm:$0xf] %v1418_v51  ;;  %1430 = vst [vmem:[%s259_s14 + $0x8] sm:$0xf] %v1422_v52 }
 0x19a   : > { %1431 = vst [vmem:[%s259_s14 + $0xc] sm:$0xf] %v1426_v36 }
 0x19b   : > { %2276 = shalt.err (!%p2273_p7)
}
 0x19c   : > { %s2277_s7 = scalar_lea.hbm %s2688_s5, 256  ;;  %s2281_s18 = scalar_lea.hbm %s2801_s3, 512 }
 0x19d   : > { %p2278_p3 = scmp.ne.s32.totalorder %s2688_s5, %s2277_s7  ;;  %p2282_p6 = scmp.lt.u32.totalorder %s2688_s5, %s2801_s3 }
 0x19e   : > { %p2283_p8 = scmp.lt.u32.totalorder %s2281_s18, %s2277_s7  ;;  %p2285_p11 = scmp.lt.u32.totalorder %s2277_s7, %s2688_s5 }
 0x19f   : > { %p2279_p13 = pnand %p2278_p3, %p2514_p10 }
 0x1a0   : > { %p2284_p12 = por %p2283_p8, %p2282_p6 }
 0x1a1   : > { %p2280_p4 = pneg %p2279_p13 }
 0x1a2   : > { %p2286_p0 = por %p2285_p11, %p2284_p12 }
 0x1a4   : > { %p2287_p5 = pnand %p2286_p0, %p2280_p4 }
 0x1a6   : > { %2290 = shalt.err (!%p2287_p5)
}
 0x1a7   : > { %1950 = dma.vmem_to_hbm [thread:$0]  (%p2514_p10), %s2690_s27, 256, %s2688_s5, %s2692_s21, %s2391_s13, %s2391_s13, %s2392_s9   ;;  %v1432_v58 = vpack.c.bf16 %v1044_v55, %v1044_v55  ;;  %v1440_v59 = vpack.c.bf16 %v1085_v56, %v1085_v56  ;;  %v1046_v60 = vpop.f32.mrb[9].mxu0  ;;  %v1087_v61 = vpop.f32.mrb[9].mxu1 }
 0x1a8   : > { %v1466_v62 = vpack.c.bf16 %v1046_v60, %v1046_v60  ;;  %v1474_v63 = vpack.c.bf16 %v1087_v61, %v1087_v61  ;;  %v1048_v1 = vpop.f32.mrb[10].mxu0  ;;  %v1089_v2 = vpop.f32.mrb[10].mxu1  ;;  %s266_s27 = scalar_lea.vmem [#allocation10], %s2618_s23  ;;  %s2744_s30 = scalar_lea.hbm %s2802_s4, %s2624_s25 }
 0x1a9   : > { %v1439_v3 = vrot.slane %v1432_v58, %v2596_v44  ;;  %v1447_v4 = vrot.slane %v1440_v59, %v2596_v44  ;;  %v1049_v5 = vpop.f32.mrb[11].mxu0  ;;  %v1090_v6 = vpop.f32.mrb[11].mxu1  ;;  %s1661_s5 = sshll.u32 %s266_s27, 4  ;;  %s2394_s7 = smov [#allocation10]   ;;  %s2746_s5 = int_to_ptr.vmem [resolvable:$true] %s1661_s5 }
 0x1aa   : > { %v1473_v7 = vrot.slane %v1466_v62, %v2596_v44  ;;  %v1481_v8 = vrot.slane %v1474_v63, %v2596_v44  ;;  %s2291_s23 = scalar_lea.vmem %s2746_s5, 256  ;;  %s2295_s28 = sshll.u32 %s2394_s7, 4  ;;  %s2296_s28 = int_to_ptr.vmem [resolvable:$false] %s2295_s28 }
 0x1ab   : > { %v1448_v9 = vcombine.low %v1439_v3, %v1447_v4  ;;  %v1449_v10 = vcombine.high %v1439_v3, %v1447_v4  ;;  %p2292_p9 = scmp.ne.s32.totalorder %s2746_s5, %s2291_s23  ;;  %s2297_s14 = scalar_lea.vmem %s2296_s28, 512 }
 0x1ac   : > { %v1482_v11 = vcombine.low %v1473_v7, %v1481_v8  ;;  %v1483_v12 = vcombine.high %v1473_v7, %v1481_v8  ;;  %p2298_p7 = scmp.lt.s32.totalorder %s2746_s5, %s2296_s28  ;;  %p2299_p3 = scmp.lt.s32.totalorder %s2297_s14, %s2291_s23 }
 0x1ad   : > { %v1456_v13 = vrot.slane %v1448_v9, %v2600_v57  ;;  %v1463_v14 = vrot.slane %v1449_v10, %v2600_v57  ;;  %p2293_p1 = pnand %p2292_p9, %p2514_p10 }
 0x1ae   : > { %v1490_v15 = vrot.slane %v1482_v11, %v2600_v57  ;;  %v1497_v16 = vrot.slane %v1483_v12, %v2600_v57  ;;  %p2300_p13 = por %p2299_p3, %p2298_p7 }
 0x1af   : > { %v1464_v17 = vcombine.high %v1456_v13, %v2387_v0  ;;  %v1465_v18 = vcombine.high %v1463_v14, %v2387_v0  ;;  %v1504_v19 = vshrl.u32 %v1456_v13, 16  ;;  %v1520_v20 = vshrl.u32 %v1463_v14, 16  ;;  %p2294_p2 = pneg %p2293_p1 }
 0x1b0   : > { %v1498_v21 = vcombine.high %v1490_v15, %v2387_v0  ;;  %v1499_v22 = vcombine.high %v1497_v16, %v2387_v0  ;;  %v1502_v23 = vpack.i.b16 %v1490_v15, %v1456_v13  ;;  %v1505_v24 = vshrl.u32 %v1490_v15, 16 }
 0x1b1   : > { %v1512_v25 = vshrl.u32 %v1464_v17, 16  ;;  %v1528_v26 = vshrl.u32 %v1465_v18, 16  ;;  %v1518_v27 = vpack.i.b16 %v1497_v16, %v1463_v14  ;;  %v1521_v28 = vshrl.u32 %v1497_v16, 16  ;;  %p2301_p4 = pnand %p2300_p13, %p2294_p2 }
 0x1b2   : > { %v1506_v29 = vpack.i.b16 %v1505_v24, %v1504_v19  ;;  %v1510_v30 = vpack.i.b16 %v1498_v21, %v1464_v17  ;;  %v1513_v31 = vshrl.u32 %v1498_v21, 16  ;;  %v1526_v32 = vpack.i.b16 %v1499_v22, %v1465_v18 }
 0x1b3   : > { %v1522_v33 = vpack.i.b16 %v1521_v28, %v1520_v20  ;;  %v1529_v34 = vshrl.u32 %v1499_v22, 16  ;;  %v1532_v35 = vcombine.low %v1502_v23, %v1518_v27 }
 0x1b4   : > { %v1514_v37 = vpack.i.b16 %v1513_v31, %v1512_v25  ;;  %v1540_v38 = vcombine.low %v1510_v30, %v1526_v32 }
 0x1b5   : > { %v1530_v39 = vpack.i.b16 %v1529_v34, %v1528_v26  ;;  %v1557_v40 = vcombine.low %v1506_v29, %v1522_v33  ;;  %v1539_v41 = vrot.slane %v1532_v35, %v2596_v44 }
 0x1b6   : > { %v1547_v42 = vrot.slane %v1540_v38, %v2596_v44 }
 0x1b7   : > { %v1565_v43 = vcombine.low %v1514_v37, %v1530_v39  ;;  %v1564_v46 = vrot.slane %v1557_v40, %v2596_v44 }
 0x1b8   : > { %v1548_v45 = vcombine.low %v1539_v41, %v1547_v42 }
 0x1b9   : > { %v1572_v47 = vrot.slane %v1565_v43, %v2596_v44 }
 0x1ba   : > { %v1555_v48 = vrot.slane %v1548_v45, %v2600_v57 }
 0x1bb   : > { %v1573_v49 = vcombine.low %v1564_v46, %v1572_v47 }
 0x1bc   : > { %v1556_v50 = vcombine.high %v1555_v48, %v2387_v0  ;;  %v1586_v54 = vshrl.u32 %v1555_v48, 16 }
 0x1bd   : > { %v1580_v51 = vrot.slane %v1573_v49, %v2600_v57 }
 0x1be   : > { %v1594_v58 = vshrl.u32 %v1556_v50, 16 }
 0x1bf   : > { %v1581_v52 = vcombine.high %v1580_v51, %v2387_v0  ;;  %v1584_v53 = vpack.i.b16 %v1580_v51, %v1555_v48  ;;  %v1587_v36 = vshrl.u32 %v1580_v51, 16 }
 0x1c1   : > { %v1588_v55 = vpack.i.b16 %v1587_v36, %v1586_v54  ;;  %v1592_v56 = vpack.i.b16 %v1581_v52, %v1556_v50  ;;  %v1595_v44 = vshrl.u32 %v1581_v52, 16  ;;  %1598 = vst [vmem:[%s266_s27] sm:$0xf] %v1584_v53 }
 0x1c3   : > { %v1596_v59 = vpack.i.b16 %v1595_v44, %v1594_v58  ;;  %1599 = vst [vmem:[%s266_s27 + $0x4] sm:$0xf] %v1588_v55  ;;  %1600 = vst [vmem:[%s266_s27 + $0x8] sm:$0xf] %v1592_v56 }
 0x1c5   : > { %1601 = vst [vmem:[%s266_s27 + $0xc] sm:$0xf] %v1596_v59 }
 0x1c6   : > { %2304 = shalt.err (!%p2301_p4)
}
 0x1c7   : > { %s2305_s25 = scalar_lea.hbm %s2744_s30, 256  ;;  %s2309_s12 = scalar_lea.hbm %s2802_s4, 512 }
 0x1c8   : > { %p2306_p6 = scmp.ne.s32.totalorder %s2744_s30, %s2305_s25  ;;  %p2310_p11 = scmp.lt.u32.totalorder %s2744_s30, %s2802_s4 }
 0x1c9   : > { %p2311_p0 = scmp.lt.u32.totalorder %s2309_s12, %s2305_s25  ;;  %p2313_p9 = scmp.lt.u32.totalorder %s2305_s25, %s2744_s30 }
 0x1ca   : > { %p2307_p8 = pnand %p2306_p6, %p2514_p10 }
 0x1cb   : > { %p2312_p5 = por %p2311_p0, %p2310_p11 }
 0x1cc   : > { %p2308_p12 = pneg %p2307_p8 }
 0x1cd   : > { %p2314_p1 = por %p2313_p9, %p2312_p5 }
 0x1cf   : > { %p2315_p2 = pnand %p2314_p1, %p2308_p12 }
 0x1d1   : > { %2318 = shalt.err (!%p2315_p2)
}
 0x1d2   : > { %1951 = dma.vmem_to_hbm [thread:$0]  (%p2514_p10), %s2746_s5, 256, %s2744_s30, %s2692_s21, %s2391_s13, %s2391_s13, %s2392_s9  }
 0x1d3 PF: > { %s1676_s26 = sand.u32 1, %s2361_s15   ;;  %p2818_p7 = scmp.ne.s32.totalorder %s2807_s24, 0 }
 0x1d4   : > { %p2819_p3 = scmp.ge.s32.totalorder %s2381_s20, 2  ;;  %s1677_s23 = scalar_lea.sflag [#allocation4], %s1676_s26 }
 0x1d6   : > { %p1964_p13 = pnand %p2819_p3, %p2818_p7 }
 0x1d8   : > { %2352 = dma.done.wait (!%p1964_p13), %s1677_s23, 256  }
 0x1d9   : > { %2354 = vsyncadd (!%p1964_p13), %s1677_s23, 4294967040  ;;  %s1685_s6 = sand.u32 1, %s1821_s22  }
 0x1da   : > { %s1686_s7 = scalar_lea.sflag [#allocation9], %s1685_s6 }
 0x1db   : > { %2356 = dma.done.wait (!%p1964_p13), %s1686_s7, 512  }
 0x1dc   : > { %2358 = vsyncadd (!%p1964_p13), %s1686_s7, 4294966784  ;;  %s25_s20 = sadd.s32 1, %s2381_s20   ;;  %s2820_s15 = smov %s2365_s16 }
 0x1dd   : > { %p22_p10 = scmp.ge.s32.totalorder %s25_s20, 4   ;;  %s2821_s16 = smov %s2369_s17 }
 0x1de   : > { %s2822_s17 = smov %s2523_s8  ;;  %s2823_s18 = smov %s2377_s19 }
 0x1df   : > { %s2824_s19 = smov %s2826_s29  ;;  %24 = sbr.rel (!%p22_p10) target bundleno = 9 (0x9), region = 109 }
 0x1e6   :  { %1700 = vsyncpa [#allocation3], 1 }
 0x1e7   :  { %1702 = vsyncpa [#allocation3 + $0x1], 1 }
 0x1e8   :  { %1703 = vsyncpa [#allocation6], 1 }
 0x1e9   :  { %1704 = vsyncpa [#allocation4], 1 }
 0x1ea   :  { %1706 = vsyncpa [#allocation4 + $0x1], 1 }
 0x1eb   :  { %1707 = vsyncpa [#allocation9], 1 }
 0x1ec   :  { %1709 = vsyncpa [#allocation9 + $0x1], 1 }

</bundles_post_ra>
